<compile_context>
chip_gen: v5e
topology: v5e:2x2
jax: 0.10.0
libtpu: 0.0.40
codegen_flags: <defaults>
</compile_context>

<pallas_src>
import functools

import jax
import jax.numpy as jnp
from jax.experimental import pallas as pl
from jax.experimental.pallas import tpu as pltpu


# ----------------------------- Pallas kernel -------------------------------


def _moe_expert_kernel(
    sel_ref,    # (num_tiles*E,) int32 SMEM prefetch: tile/expert activity
    x_ref,      # (TM, Hp)      token tile (compute dtype)
    wgu_ref,    # (Hp, 2I)      fused base gate|up, pre-transposed
    wd_ref,     # (I, Hp)       base down, pre-transposed
    ag_ref,     # (E, Hp, R)    LoRA-A gate, pre-transposed, VMEM resident
    au_ref,     # (E, Hp, R)    LoRA-A up,   pre-transposed, VMEM resident
    bg_ref,     # (E, R, I)     LoRA-B gate, pre-transposed, VMEM resident
    bu_ref,     # (E, R, I)     LoRA-B up,   pre-transposed, VMEM resident
    ad_ref,     # (E, I, R)     LoRA-A down, pre-transposed, VMEM resident
    bd_ref,     # (E, R, Hp)    LoRA-B down, pre-transposed, VMEM resident
    w_ref,      # (TM, E) f32   routing weights (0 for unselected experts)
    out_ref,    # (TM, Hp)
    gu0_ref,    # scratch (TM, 2I) f32 : hoisted base gate|up
    hacc_ref,   # scratch (TM, I)  f32 : sum_e w_e * h_e
    acc_ref,    # scratch (TM, Hp) f32 : sum_e w_e * lora_down_e
):
    t = pl.program_id(0)
    e = pl.program_id(1)
    n_e = pl.num_programs(1)
    inter = hacc_ref.shape[1]            # I
    cdtype = wgu_ref.dtype               # MXU operand dtype

    # ---- init per token tile: shared base gate/up matmul, done ONCE per tile
    @pl.when(e == 0)
    def _init():
        gu0_ref[...] = jnp.dot(
            x_ref[...], wgu_ref[...], preferred_element_type=jnp.float32
        )
        hacc_ref[...] = jnp.zeros_like(hacc_ref)
        acc_ref[...] = jnp.zeros_like(acc_ref)

    # ---- per-expert LoRA work; skipped when no token in this tile routes to
    #      expert e (exact: its routing weights are all zero).
    @pl.when(sel_ref[t * n_e + e] > 0)
    def _expert():
        x = x_ref[...]
        # rank-R LoRA-A / LoRA-B (weights resident in VMEM -> no per-step DMA)
        a_g = jnp.dot(x, ag_ref[e], preferred_element_type=jnp.float32)   # (TM, R)
        a_u = jnp.dot(x, au_ref[e], preferred_element_type=jnp.float32)   # (TM, R)
        lora_g = jnp.dot(
            a_g.astype(cdtype), bg_ref[e], preferred_element_type=jnp.float32
        )                                                                 # (TM, I)
        lora_u = jnp.dot(
            a_u.astype(cdtype), bu_ref[e], preferred_element_type=jnp.float32
        )                                                                 # (TM, I)

        # process gate/up halves separately (no (TM, 2I) f32 temporary)
        gate = gu0_ref[:, :inter] + lora_g
        up = gu0_ref[:, inter:] + lora_u
        h = gate * jax.nn.sigmoid(gate) * up         # SiLU(gate) * up, f32

        # routing weight column e of the resident (TM, E) block
        col = jax.lax.broadcasted_iota(jnp.int32, w_ref.shape, 1)
        w = jnp.sum(
            jnp.where(col == e, w_ref[...], 0.0), axis=1, keepdims=True
        )                                             # (TM, 1) f32

        hw = h * w                                    # weighted hidden state
        hacc_ref[...] += hw                           # shared Wd applied at the end
        hw_c = hw.astype(cdtype)
        lo = jnp.dot(hw_c, ad_ref[e], preferred_element_type=jnp.float32)  # (TM, R)
        acc_ref[...] += jnp.dot(
            lo.astype(cdtype), bd_ref[e], preferred_element_type=jnp.float32
        )

    # ---- finalize per token tile: single shared down projection + cast/store
    @pl.when(e == n_e - 1)
    def _final():
        down = jnp.dot(
            hacc_ref[...].astype(cdtype), wd_ref[...],
            preferred_element_type=jnp.float32,
        )
        out_ref[...] = (down + acc_ref[...]).astype(out_ref.dtype)


# ------------------------------ Python wrapper ------------------------------


def _round_up(v, m):
    return ((v + m - 1) // m) * m


@functools.partial(
    jax.jit,
    static_argnames=("top_k", "norm_topk_prob", "token_block", "compute_dtype"),
)
def sparse_moe_forward(hidden_states, params, *, top_k, norm_topk_prob,
                       token_block=256, compute_dtype=None):
    B, S, H = hidden_states.shape
    T = B * S
    x = hidden_states.reshape(T, H)
    in_dtype = x.dtype
    cdtype = jnp.dtype(compute_dtype) if compute_dtype is not None else in_dtype

    gate_w = params["gate_w"]            # (E, H)
    E = gate_w.shape[0]
    I = params["wg"].shape[0]
    R = params["ag"].shape[1]

    # ---- router + routing (tiny ops -> plain XLA) ----
    router_logits = jnp.dot(x, gate_w.T)                                # (T, E)
    probs = jax.nn.softmax(router_logits.astype(jnp.float32), axis=-1)
    top_w, top_e = jax.lax.top_k(probs, top_k)                          # (T, K)
    if norm_topk_prob:
        top_w = top_w / jnp.sum(top_w, axis=-1, keepdims=True)
    top_w = top_w.astype(in_dtype)                                      # reference cast
    onehot = jax.nn.one_hot(top_e, E, dtype=jnp.float32)                # (T, K, E)
    w_te = jnp.einsum("tk,tke->te", top_w.astype(jnp.float32), onehot)  # (T, E) f32

    # ---- lane-dense hidden dim for the kernel path (slice off afterwards) ----
    h_pad = max(_round_up(H, 128), 128)
    dh = h_pad - H

    # ---- weight prep: transpose / fuse / pad ONCE, outside the kernel ----
    wgu_t = jnp.concatenate([params["wg"], params["wu"]], axis=0).T          # (H, 2I)
    wgu_t = jnp.pad(wgu_t, ((0, dh), (0, 0))).astype(cdtype)                 # (Hp, 2I)
    wd_t = jnp.pad(params["wd"].T, ((0, 0), (0, dh))).astype(cdtype)         # (I, Hp)
    ag_t = jnp.pad(jnp.transpose(params["ag"], (0, 2, 1)),
                   ((0, 0), (0, dh), (0, 0))).astype(cdtype)                 # (E, Hp, R)
    au_t = jnp.pad(jnp.transpose(params["au"], (0, 2, 1)),
                   ((0, 0), (0, dh), (0, 0))).astype(cdtype)                 # (E, Hp, R)
    bg_t = jnp.transpose(params["bg"], (0, 2, 1)).astype(cdtype)             # (E, R, I)
    bu_t = jnp.transpose(params["bu"], (0, 2, 1)).astype(cdtype)             # (E, R, I)
    ad_t = jnp.transpose(params["ad"], (0, 2, 1)).astype(cdtype)             # (E, I, R)
    bd_t = jnp.pad(jnp.transpose(params["bd"], (0, 2, 1)),
                   ((0, 0), (0, 0), (0, dh))).astype(cdtype)                 # (E, R, Hp)

    # ---- token tiling: 16-sublane multiple, >= 2 tiles when possible (v7x) ----
    sub = 16
    tm = max(sub, min(token_block, _round_up(pl.cdiv(T, 2), sub)))
    t_pad = _round_up(T, tm)
    num_tiles = t_pad // tm

    x_p = jnp.pad(x, ((0, t_pad - T), (0, dh))).astype(cdtype)               # (Tp, Hp)
    w_p = jnp.pad(w_te, ((0, t_pad - T), (0, 0)))                            # (Tp, E)

    # per-(tile, expert) activity mask, flattened 1-D for SMEM prefetch
    sel = (jnp.max(w_p.reshape(num_tiles, tm, E), axis=1) > 0)
    sel = sel.astype(jnp.int32).reshape(-1)                                  # (num_tiles*E,)

    two_i = 2 * I

    grid_spec = pltpu.PrefetchScalarGridSpec(
        num_scalar_prefetch=1,
        grid=(num_tiles, E),
        in_specs=[
            pl.BlockSpec((tm, h_pad), lambda t, e, s: (t, 0)),          # x tile
            pl.BlockSpec((h_pad, two_i), lambda t, e, s: (0, 0)),       # Wg|Wu (pre-T)
            pl.BlockSpec((I, h_pad), lambda t, e, s: (0, 0)),           # Wd (pre-T)
            pl.BlockSpec((E, h_pad, R), lambda t, e, s: (0, 0, 0)),     # Ag (resident)
            pl.BlockSpec((E, h_pad, R), lambda t, e, s: (0, 0, 0)),     # Au (resident)
            pl.BlockSpec((E, R, I), lambda t, e, s: (0, 0, 0)),         # Bg (resident)
            pl.BlockSpec((E, R, I), lambda t, e, s: (0, 0, 0)),         # Bu (resident)
            pl.BlockSpec((E, I, R), lambda t, e, s: (0, 0, 0)),         # Ad (resident)
            pl.BlockSpec((E, R, h_pad), lambda t, e, s: (0, 0, 0)),     # Bd (resident)
            pl.BlockSpec((tm, E), lambda t, e, s: (t, 0)),              # routing weights
        ],
        out_specs=pl.BlockSpec((tm, h_pad), lambda t, e, s: (t, 0)),
        scratch_shapes=[
            pltpu.VMEM((tm, two_i), jnp.float32),   # hoisted base gate|up
            pltpu.VMEM((tm, I), jnp.float32),       # sum_e w_e * h_e
            pltpu.VMEM((tm, h_pad), jnp.float32),   # sum_e w_e * lora_down_e
        ],
    )

    out_p = pl.pallas_call(
        _moe_expert_kernel,
        out_shape=jax.ShapeDtypeStruct((t_pad, h_pad), in_dtype),
        grid_spec=grid_spec,
        compiler_params=pltpu.CompilerParams(
            dimension_semantics=("parallel", "arbitrary"),
            vmem_limit_bytes=64 * 1024 * 1024,
        ),
    )(sel, x_p, wgu_t, wd_t, ag_t, au_t, bg_t, bu_t, ad_t, bd_t, w_p)

    out = out_p[:T, :H].astype(in_dtype)
    return out.reshape(B, S, H), router_logits


# --------------------------- reference (pure JAX) ---------------------------


def reference_forward(hidden_states, params, *, top_k, norm_topk_prob):
    B, S, H = hidden_states.shape
    x = hidden_states.reshape(-1, H)
    logits = x @ params["gate_w"].T
    probs = jax.nn.softmax(logits.astype(jnp.float32), axis=1)
    top_w, top_e = jax.lax.top_k(probs, top_k)
    if norm_topk_prob:
        top_w = top_w / jnp.sum(top_w, axis=-1, keepdims=True)
    top_w = top_w.astype(x.dtype)
    E = params["gate_w"].shape[0]
    onehot = jax.nn.one_hot(top_e, E, dtype=x.dtype)
    w_te = jnp.einsum("tk,tke->te", top_w, onehot)

    def expert(e, xf):
        g = xf @ params["wg"].T + (xf @ params["ag"][e].T) @ params["bg"][e].T
        u = xf @ params["wu"].T + (xf @ params["au"][e].T) @ params["bu"][e].T
        h = (g * jax.nn.sigmoid(g)) * u
        return h @ params["wd"].T + (h @ params["ad"][e].T) @ params["bd"][e].T

    out = jnp.zeros_like(x)
    for e in range(E):
        out = out + expert(e, x) * w_te[:, e:e + 1]
    return out.reshape(B, S, H), logits


# ---------------------------------- main ------------------------------------


if __name__ == "__main__":
    # Small config consistent with the module's __init__ (I is a lane multiple
    # so the fused gate|up split is vreg-aligned, as in real OLMoE configs).
    H = 64          # hidden_size
    I = 128         # intermediate_size
    R = 16          # lora_rank
    E = 8           # num_experts
    TOP_K = 2       # num_experts_per_tok
    NORM_TOPK = True
    B, S = 2, 128   # batch, sequence_length -> T = 256 tokens (2 token tiles)
    dtype = jnp.float32

    key = jax.random.PRNGKey(0)
    ks = jax.random.split(key, 12)

    def init(k, shape, fan_in):
        return (jax.random.normal(k, shape, dtype) / jnp.sqrt(fan_in)).astype(dtype)

    params = {
        "gate_w": init(ks[0], (E, H), H),        # router
        # shared basenet (expert_group_index = 0 for all experts)
        "wg": init(ks[1], (I, H), H),
        "wu": init(ks[2], (I, H), H),
        "wd": init(ks[3], (H, I), I),
        # per-expert LoRA weights
        "ag": init(ks[4], (E, R, H), H),
        "bg": init(ks[5], (E, I, R), R),
        "au": init(ks[6], (E, R, H), H),
        "bu": init(ks[7], (E, I, R), R),
        "ad": init(ks[8], (E, R, I), I),
        "bd": init(ks[9], (E, H, R), R),
    }

    hidden_states = jax.random.normal(ks[10], (B, S, H), dtype)

    # --- run 1: full-precision operands (matches the f32 reference tightly) ---
    out, logits = sparse_moe_forward(
        hidden_states, params, top_k=TOP_K, norm_topk_prob=NORM_TOPK,
        token_block=256,
    )
    out = jax.block_until_ready(out)
    logits = jax.block_until_ready(logits)

    ref_out, ref_logits = reference_forward(
        hidden_states, params, top_k=TOP_K, norm_topk_prob=NORM_TOPK
    )
    assert out.shape == (B, S, H) and logits.shape == (B * S, E)
    assert jnp.allclose(out, ref_out, rtol=1e-3, atol=1e-3)
    assert jnp.allclose(logits, ref_logits, rtol=1e-3, atol=1e-3)

    # --- run 2: bf16 MXU operands (v5e/v6e throughput mode), f32 accumulation ---
    out_bf16, _ = sparse_moe_forward(
        hidden_states, params, top_k=TOP_K, norm_topk_prob=NORM_TOPK,
        token_block=256, compute_dtype="bfloat16",
    )
    out_bf16 = jax.block_until_ready(out_bf16)
    assert out_bf16.shape == (B, S, H)
    assert jnp.allclose(out_bf16, ref_out, rtol=1e-1, atol=1e-1)

    print("KERNEL_OK")
</pallas_src>

<mosaic_0001>
module attributes {stable_mosaic.version = 11 : i64} {
  func.func @_moe_expert_kernel(%arg0: i32, %arg1: i32, %arg2: memref<16xi32, #tpu.memory_space<smem>>, %arg3: memref<128x128xf32, #tpu.memory_space<vmem>>, %arg4: memref<128x256xf32, #tpu.memory_space<vmem>>, %arg5: memref<128x128xf32, #tpu.memory_space<vmem>>, %arg6: memref<8x128x16xf32, #tpu.memory_space<vmem>>, %arg7: memref<8x128x16xf32, #tpu.memory_space<vmem>>, %arg8: memref<8x16x128xf32, #tpu.memory_space<vmem>>, %arg9: memref<8x16x128xf32, #tpu.memory_space<vmem>>, %arg10: memref<8x128x16xf32, #tpu.memory_space<vmem>>, %arg11: memref<8x16x128xf32, #tpu.memory_space<vmem>>, %arg12: memref<128x8xf32, #tpu.memory_space<vmem>>, %arg13: memref<128x128xf32, #tpu.memory_space<vmem>>, %arg14: memref<128x256xf32, #tpu.memory_space<vmem>>, %arg15: memref<128x128xf32, #tpu.memory_space<vmem>>, %arg16: memref<128x128xf32, #tpu.memory_space<vmem>>) attributes {dimension_semantics = [#tpu.dimension_semantics<parallel>, #tpu.dimension_semantics<arbitrary>], iteration_bounds = array<i64: 2, 8>, scalar_prefetch = 1 : i64, scratch_operands = 3 : i64, tpu.core_type = #tpu.core_type<tc>, window_params = [{transform_indices = @transform_0, window_bounds = array<i64: 128, 128>}, {pipeline_mode = #tpu.pipeline_mode<synchronous>, transform_indices = @transform_1, window_bounds = array<i64: 128, 256>}, {pipeline_mode = #tpu.pipeline_mode<synchronous>, transform_indices = @transform_2, window_bounds = array<i64: 128, 128>}, {pipeline_mode = #tpu.pipeline_mode<synchronous>, transform_indices = @transform_3, window_bounds = array<i64: 8, 128, 16>}, {pipeline_mode = #tpu.pipeline_mode<synchronous>, transform_indices = @transform_4, window_bounds = array<i64: 8, 128, 16>}, {pipeline_mode = #tpu.pipeline_mode<synchronous>, transform_indices = @transform_5, window_bounds = array<i64: 8, 16, 128>}, {pipeline_mode = #tpu.pipeline_mode<synchronous>, transform_indices = @transform_6, window_bounds = array<i64: 8, 16, 128>}, {pipeline_mode = #tpu.pipeline_mode<synchronous>, transform_indices = @transform_7, window_bounds = array<i64: 8, 128, 16>}, {pipeline_mode = #tpu.pipeline_mode<synchronous>, transform_indices = @transform_8, window_bounds = array<i64: 8, 16, 128>}, {transform_indices = @transform_9, window_bounds = array<i64: 128, 8>}, {transform_indices = @transform_10, window_bounds = array<i64: 128, 128>}]} {
    %c0_i32 = arith.constant 0 : i32
    %0 = arith.cmpi eq, %arg1, %c0_i32 : i32
    %1 = arith.extui %0 : i1 to i32
    %c0_i32_0 = arith.constant 0 : i32
    %2 = arith.cmpi ne, %1, %c0_i32_0 : i32
    scf.if %2 {
      %c0 = arith.constant 0 : index
      %c0_4 = arith.constant 0 : index
      %13 = vector.load %arg3[%c0, %c0_4] : memref<128x128xf32, #tpu.memory_space<vmem>>, vector<128x128xf32>
      %c0_5 = arith.constant 0 : index
      %c0_6 = arith.constant 0 : index
      %14 = vector.load %arg4[%c0_5, %c0_6] : memref<128x256xf32, #tpu.memory_space<vmem>>, vector<128x256xf32>
      %cst = arith.constant dense<0.000000e+00> : vector<128x256xf32>
      %15 = tpu.matmul %13, %14, %cst {dimension_numbers = #tpu.dot_dimension_numbers<[1], [0], [0], [1], [0, 0, 1, 1], [], []>} : vector<128x128xf32>, vector<128x256xf32>, vector<128x256xf32> -> vector<128x256xf32>
      %c0_7 = arith.constant 0 : index
      %c0_8 = arith.constant 0 : index
      %16 = vector.load %arg14[%c0_7, %c0_8] : memref<128x256xf32, #tpu.memory_space<vmem>>, vector<128x256xf32>
      tpu.vector_store %arg14[%c0_7, %c0_8], %15 {strides = array<i32>} : memref<128x256xf32, #tpu.memory_space<vmem>>, vector<128x256xf32>,
      %cst_9 = arith.constant 0.000000e+00 : f32
      %17 = vector.broadcast %cst_9 : f32 to vector<128x128xf32>
      %c0_10 = arith.constant 0 : index
      %c0_11 = arith.constant 0 : index
      %18 = vector.load %arg15[%c0_10, %c0_11] : memref<128x128xf32, #tpu.memory_space<vmem>>, vector<128x128xf32>
      tpu.vector_store %arg15[%c0_10, %c0_11], %17 {strides = array<i32>} : memref<128x128xf32, #tpu.memory_space<vmem>>, vector<128x128xf32>,
      %cst_12 = arith.constant 0.000000e+00 : f32
      %19 = vector.broadcast %cst_12 : f32 to vector<128x128xf32>
      %c0_13 = arith.constant 0 : index
      %c0_14 = arith.constant 0 : index
      %20 = vector.load %arg16[%c0_13, %c0_14] : memref<128x128xf32, #tpu.memory_space<vmem>>, vector<128x128xf32>
      tpu.vector_store %arg16[%c0_13, %c0_14], %19 {strides = array<i32>} : memref<128x128xf32, #tpu.memory_space<vmem>>, vector<128x128xf32>,
    } else {
    }
    %c8_i32 = arith.constant 8 : i32
    %3 = arith.muli %arg0, %c8_i32 : i32
    %4 = arith.addi %3, %arg1 : i32
    %5 = arith.index_cast %4 : i32 to index
    %6 = memref.load %arg2[%5] : memref<16xi32, #tpu.memory_space<smem>>
    %c0_i32_1 = arith.constant 0 : i32
    %7 = arith.cmpi sgt, %6, %c0_i32_1 : i32
    %8 = arith.extui %7 : i1 to i32
    %c0_i32_2 = arith.constant 0 : i32
    %9 = arith.cmpi ne, %8, %c0_i32_2 : i32
    scf.if %9 {
      %c0 = arith.constant 0 : index
      %c0_4 = arith.constant 0 : index
      %13 = vector.load %arg3[%c0, %c0_4] : memref<128x128xf32, #tpu.memory_space<vmem>>, vector<128x128xf32>
      %14 = arith.index_cast %arg1 : i32 to index
      %c0_5 = arith.constant 0 : index
      %c0_6 = arith.constant 0 : index
      %15 = vector.load %arg6[%14, %c0_5, %c0_6] : memref<8x128x16xf32, #tpu.memory_space<vmem>>, vector<1x128x16xf32>
      %16 = vector.shape_cast %15 : vector<1x128x16xf32> to vector<128x16xf32>
      %cst = arith.constant dense<0.000000e+00> : vector<128x16xf32>
      %17 = tpu.matmul %13, %16, %cst {dimension_numbers = #tpu.dot_dimension_numbers<[1], [0], [0], [1], [0, 0, 1, 1], [], []>} : vector<128x128xf32>, vector<128x16xf32>, vector<128x16xf32> -> vector<128x16xf32>
      %18 = arith.index_cast %arg1 : i32 to index
      %c0_7 = arith.constant 0 : index
      %c0_8 = arith.constant 0 : index
      %19 = vector.load %arg7[%18, %c0_7, %c0_8] : memref<8x128x16xf32, #tpu.memory_space<vmem>>, vector<1x128x16xf32>
      %20 = vector.shape_cast %19 : vector<1x128x16xf32> to vector<128x16xf32>
      %cst_9 = arith.constant dense<0.000000e+00> : vector<128x16xf32>
      %21 = tpu.matmul %13, %20, %cst_9 {dimension_numbers = #tpu.dot_dimension_numbers<[1], [0], [0], [1], [0, 0, 1, 1], [], []>} : vector<128x128xf32>, vector<128x16xf32>, vector<128x16xf32> -> vector<128x16xf32>
      %22 = arith.index_cast %arg1 : i32 to index
      %c0_10 = arith.constant 0 : index
      %c0_11 = arith.constant 0 : index
      %23 = vector.load %arg8[%22, %c0_10, %c0_11] : memref<8x16x128xf32, #tpu.memory_space<vmem>>, vector<1x16x128xf32>
      %24 = vector.shape_cast %23 : vector<1x16x128xf32> to vector<16x128xf32>
      %cst_12 = arith.constant dense<0.000000e+00> : vector<128x128xf32>
      %25 = tpu.matmul %17, %24, %cst_12 {dimension_numbers = #tpu.dot_dimension_numbers<[1], [0], [0], [1], [0, 0, 1, 1], [], []>} : vector<128x16xf32>, vector<16x128xf32>, vector<128x128xf32> -> vector<128x128xf32>
      %26 = arith.index_cast %arg1 : i32 to index
      %c0_13 = arith.constant 0 : index
      %c0_14 = arith.constant 0 : index
      %27 = vector.load %arg9[%26, %c0_13, %c0_14] : memref<8x16x128xf32, #tpu.memory_space<vmem>>, vector<1x16x128xf32>
      %28 = vector.shape_cast %27 : vector<1x16x128xf32> to vector<16x128xf32>
      %cst_15 = arith.constant dense<0.000000e+00> : vector<128x128xf32>
      %29 = tpu.matmul %21, %28, %cst_15 {dimension_numbers = #tpu.dot_dimension_numbers<[1], [0], [0], [1], [0, 0, 1, 1], [], []>} : vector<128x16xf32>, vector<16x128xf32>, vector<128x128xf32> -> vector<128x128xf32>
      %c0_16 = arith.constant 0 : index
      %c0_17 = arith.constant 0 : index
      %30 = vector.load %arg14[%c0_16, %c0_17] : memref<128x256xf32, #tpu.memory_space<vmem>>, vector<128x128xf32>
      %31 = arith.addf %30, %25 : vector<128x128xf32>
      %c0_18 = arith.constant 0 : index
      %c128 = arith.constant 128 : index
      %32 = vector.load %arg14[%c0_18, %c128] : memref<128x256xf32, #tpu.memory_space<vmem>>, vector<128x128xf32>
      %33 = arith.addf %32, %29 : vector<128x128xf32>
      %34 = arith.negf %31 : vector<128x128xf32>
      %35 = math.exp %34 : vector<128x128xf32>
      %cst_19 = arith.constant 1.000000e+00 : f32
      %36 = vector.broadcast %cst_19 : f32 to vector<128x128xf32>
      %37 = arith.addf %36, %35 : vector<128x128xf32>
      %38 = arith.divf %36, %37 : vector<128x128xf32>
      %39 = arith.mulf %31, %38 : vector<128x128xf32>
      %40 = arith.mulf %39, %33 : vector<128x128xf32>
      %41 = tpu.iota {dimensions = array<i32: 1>} : vector<128x8xi32>
      %42 = vector.broadcast %arg1 : i32 to vector<128x8xi32>
      %43 = arith.cmpi eq, %41, %42 : vector<128x8xi32>
      %c0_20 = arith.constant 0 : index
      %c0_21 = arith.constant 0 : index
      %44 = vector.load %arg12[%c0_20, %c0_21] : memref<128x8xf32, #tpu.memory_space<vmem>>, vector<128x8xf32>
      %cst_22 = arith.constant 0.000000e+00 : f32
      %45 = vector.broadcast %cst_22 : f32 to vector<128x8xf32>
      %46 = arith.select %43, %44, %45 : vector<128x8xi1>, vector<128x8xf32>
      %cst_23 = arith.constant dense<0.000000e+00> : vector<128xf32>
      %47 = vector.multi_reduction <add>, %46, %cst_23 [1] : vector<128x8xf32> to vector<128xf32>
      %48 = vector.shape_cast %47 : vector<128xf32> to vector<128x1xf32>
      %49 = vector.broadcast %48 : vector<128x1xf32> to vector<128x128xf32>
      %50 = arith.mulf %40, %49 : vector<128x128xf32>
      %c0_24 = arith.constant 0 : index
      %c0_25 = arith.constant 0 : index
      %51 = vector.load %arg15[%c0_24, %c0_25] : memref<128x128xf32, #tpu.memory_space<vmem>>, vector<128x128xf32>
      %52 = arith.addf %51, %50 : vector<128x128xf32>
      %c0_26 = arith.constant 0 : index
      %c0_27 = arith.constant 0 : index
      %53 = vector.load %arg15[%c0_26, %c0_27] : memref<128x128xf32, #tpu.memory_space<vmem>>, vector<128x128xf32>
      tpu.vector_store %arg15[%c0_26, %c0_27], %52 {strides = array<i32>} : memref<128x128xf32, #tpu.memory_space<vmem>>, vector<128x128xf32>,
      %54 = arith.index_cast %arg1 : i32 to index
      %c0_28 = arith.constant 0 : index
      %c0_29 = arith.constant 0 : index
      %55 = vector.load %arg10[%54, %c0_28, %c0_29] : memref<8x128x16xf32, #tpu.memory_space<vmem>>, vector<1x128x16xf32>
      %56 = vector.shape_cast %55 : vector<1x128x16xf32> to vector<128x16xf32>
      %cst_30 = arith.constant dense<0.000000e+00> : vector<128x16xf32>
      %57 = tpu.matmul %50, %56, %cst_30 {dimension_numbers = #tpu.dot_dimension_numbers<[1], [0], [0], [1], [0, 0, 1, 1], [], []>} : vector<128x128xf32>, vector<128x16xf32>, vector<128x16xf32> -> vector<128x16xf32>
      %c0_31 = arith.constant 0 : index
      %c0_32 = arith.constant 0 : index
      %58 = vector.load %arg16[%c0_31, %c0_32] : memref<128x128xf32, #tpu.memory_space<vmem>>, vector<128x128xf32>
      %59 = arith.index_cast %arg1 : i32 to index
      %c0_33 = arith.constant 0 : index
      %c0_34 = arith.constant 0 : index
      %60 = vector.load %arg11[%59, %c0_33, %c0_34] : memref<8x16x128xf32, #tpu.memory_space<vmem>>, vector<1x16x128xf32>
      %61 = vector.shape_cast %60 : vector<1x16x128xf32> to vector<16x128xf32>
      %cst_35 = arith.constant dense<0.000000e+00> : vector<128x128xf32>
      %62 = tpu.matmul %57, %61, %cst_35 {dimension_numbers = #tpu.dot_dimension_numbers<[1], [0], [0], [1], [0, 0, 1, 1], [], []>} : vector<128x16xf32>, vector<16x128xf32>, vector<128x128xf32> -> vector<128x128xf32>
      %63 = arith.addf %58, %62 : vector<128x128xf32>
      %c0_36 = arith.constant 0 : index
      %c0_37 = arith.constant 0 : index
      %64 = vector.load %arg16[%c0_36, %c0_37] : memref<128x128xf32, #tpu.memory_space<vmem>>, vector<128x128xf32>
      tpu.vector_store %arg16[%c0_36, %c0_37], %63 {strides = array<i32>} : memref<128x128xf32, #tpu.memory_space<vmem>>, vector<128x128xf32>,
    } else {
    }
    %c7_i32 = arith.constant 7 : i32
    %10 = arith.cmpi eq, %arg1, %c7_i32 : i32
    %11 = arith.extui %10 : i1 to i32
    %c0_i32_3 = arith.constant 0 : i32
    %12 = arith.cmpi ne, %11, %c0_i32_3 : i32
    scf.if %12 {
      %c0 = arith.constant 0 : index
      %c0_4 = arith.constant 0 : index
      %13 = vector.load %arg15[%c0, %c0_4] : memref<128x128xf32, #tpu.memory_space<vmem>>, vector<128x128xf32>
      %c0_5 = arith.constant 0 : index
      %c0_6 = arith.constant 0 : index
      %14 = vector.load %arg5[%c0_5, %c0_6] : memref<128x128xf32, #tpu.memory_space<vmem>>, vector<128x128xf32>
      %cst = arith.constant dense<0.000000e+00> : vector<128x128xf32>
      %15 = tpu.matmul %13, %14, %cst {dimension_numbers = #tpu.dot_dimension_numbers<[1], [0], [0], [1], [0, 0, 1, 1], [], []>} : vector<128x128xf32>, vector<128x128xf32>, vector<128x128xf32> -> vector<128x128xf32>
      %c0_7 = arith.constant 0 : index
      %c0_8 = arith.constant 0 : index
      %16 = vector.load %arg16[%c0_7, %c0_8] : memref<128x128xf32, #tpu.memory_space<vmem>>, vector<128x128xf32>
      %17 = arith.addf %15, %16 : vector<128x128xf32>
      %c0_9 = arith.constant 0 : index
      %c0_10 = arith.constant 0 : index
      %18 = vector.load %arg13[%c0_9, %c0_10] : memref<128x128xf32, #tpu.memory_space<vmem>>, vector<128x128xf32>
      tpu.vector_store %arg13[%c0_9, %c0_10], %17 {strides = array<i32>} : memref<128x128xf32, #tpu.memory_space<vmem>>, vector<128x128xf32>,
    } else {
    }
    return
  }
  func.func @transform_0(%arg0: i32, %arg1: i32, %arg2: memref<16xi32, #tpu.memory_space<smem>>) -> (i32, i32) {
    %c0_i32 = arith.constant 0 : i32
    %c0_i32_0 = arith.constant 0 : i32
    return %arg0, %c0_i32 : i32, i32
  }
  func.func @transform_1(%arg0: i32, %arg1: i32, %arg2: memref<16xi32, #tpu.memory_space<smem>>) -> (i32, i32) {
    %c0_i32 = arith.constant 0 : i32
    %c0_i32_0 = arith.constant 0 : i32
    %c0_i32_1 = arith.constant 0 : i32
    return %c0_i32, %c0_i32_0 : i32, i32
  }
  func.func @transform_2(%arg0: i32, %arg1: i32, %arg2: memref<16xi32, #tpu.memory_space<smem>>) -> (i32, i32) {
    %c0_i32 = arith.constant 0 : i32
    %c0_i32_0 = arith.constant 0 : i32
    %c0_i32_1 = arith.constant 0 : i32
    return %c0_i32, %c0_i32_0 : i32, i32
  }
  func.func @transform_3(%arg0: i32, %arg1: i32, %arg2: memref<16xi32, #tpu.memory_space<smem>>) -> (i32, i32, i32) {
    %c0_i32 = arith.constant 0 : i32
    %c0_i32_0 = arith.constant 0 : i32
    %c0_i32_1 = arith.constant 0 : i32
    %c0_i32_2 = arith.constant 0 : i32
    return %c0_i32, %c0_i32_0, %c0_i32_1 : i32, i32, i32
  }
  func.func @transform_4(%arg0: i32, %arg1: i32, %arg2: memref<16xi32, #tpu.memory_space<smem>>) -> (i32, i32, i32) {
    %c0_i32 = arith.constant 0 : i32
    %c0_i32_0 = arith.constant 0 : i32
    %c0_i32_1 = arith.constant 0 : i32
    %c0_i32_2 = arith.constant 0 : i32
    return %c0_i32, %c0_i32_0, %c0_i32_1 : i32, i32, i32
  }
  func.func @transform_5(%arg0: i32, %arg1: i32, %arg2: memref<16xi32, #tpu.memory_space<smem>>) -> (i32, i32, i32) {
    %c0_i32 = arith.constant 0 : i32
    %c0_i32_0 = arith.constant 0 : i32
    %c0_i32_1 = arith.constant 0 : i32
    %c0_i32_2 = arith.constant 0 : i32
    return %c0_i32, %c0_i32_0, %c0_i32_1 : i32, i32, i32
  }
  func.func @transform_6(%arg0: i32, %arg1: i32, %arg2: memref<16xi32, #tpu.memory_space<smem>>) -> (i32, i32, i32) {
    %c0_i32 = arith.constant 0 : i32
    %c0_i32_0 = arith.constant 0 : i32
    %c0_i32_1 = arith.constant 0 : i32
    %c0_i32_2 = arith.constant 0 : i32
    return %c0_i32, %c0_i32_0, %c0_i32_1 : i32, i32, i32
  }
  func.func @transform_7(%arg0: i32, %arg1: i32, %arg2: memref<16xi32, #tpu.memory_space<smem>>) -> (i32, i32, i32) {
    %c0_i32 = arith.constant 0 : i32
    %c0_i32_0 = arith.constant 0 : i32
    %c0_i32_1 = arith.constant 0 : i32
    %c0_i32_2 = arith.constant 0 : i32
    return %c0_i32, %c0_i32_0, %c0_i32_1 : i32, i32, i32
  }
  func.func @transform_8(%arg0: i32, %arg1: i32, %arg2: memref<16xi32, #tpu.memory_space<smem>>) -> (i32, i32, i32) {
    %c0_i32 = arith.constant 0 : i32
    %c0_i32_0 = arith.constant 0 : i32
    %c0_i32_1 = arith.constant 0 : i32
    %c0_i32_2 = arith.constant 0 : i32
    return %c0_i32, %c0_i32_0, %c0_i32_1 : i32, i32, i32
  }
  func.func @transform_9(%arg0: i32, %arg1: i32, %arg2: memref<16xi32, #tpu.memory_space<smem>>) -> (i32, i32) {
    %c0_i32 = arith.constant 0 : i32
    %c0_i32_0 = arith.constant 0 : i32
    return %arg0, %c0_i32 : i32, i32
  }
  func.func @transform_10(%arg0: i32, %arg1: i32, %arg2: memref<16xi32, #tpu.memory_space<smem>>) -> (i32, i32) {
    %c0_i32 = arith.constant 0 : i32
    %c0_i32_0 = arith.constant 0 : i32
    return %arg0, %c0_i32 : i32, i32
  }
}

</mosaic_0001>

<bundles_post_ra>
// kernel: sparse_moe_forward.1
= control target key start
LH: loop header
LB: loop body
LE: loop exit
PB: predicated region body
PF: predicated region fallthrough
CT: control target
= control target key end

     0   :  { %s2421_s20 = smov [#allocation6]   ;;  %s3138_s0 = inlined_call_operand.vmem [shape: s32[16], index: 0, kind: input, shape index: {}]   ;;  %s3139_s1 = inlined_call_operand.vmem [shape: f32[256,128], index: 1, kind: input, shape index: {}]   ;;  %s3140_s2 = inlined_call_operand.vmem [shape: f32[128,256], index: 2, kind: input, shape index: {}]   ;;  %s3141_s3 = inlined_call_operand.vmem [shape: f32[128,128], index: 3, kind: input, shape index: {}]   ;;  %s3142_s4 = inlined_call_operand.vmem [shape: f32[8,128,16], index: 4, kind: input, shape index: {}]   ;;  %s3143_s5 = inlined_call_operand.vmem [shape: f32[8,128,16], index: 5, kind: input, shape index: {}]   ;;  %s3144_s6 = inlined_call_operand.vmem [shape: f32[8,16,128], index: 6, kind: input, shape index: {}]   ;;  %s3145_s7 = inlined_call_operand.vmem [shape: f32[8,16,128], index: 7, kind: input, shape index: {}]   ;;  %s3146_s8 = inlined_call_operand.vmem [shape: f32[8,128,16], index: 8, kind: input, shape index: {}]   ;;  %s3147_s9 = inlined_call_operand.vmem [shape: f32[8,16,128], index: 9, kind: input, shape index: {}]   ;;  %s3148_s10 = inlined_call_operand.vmem [shape: f32[256,8], index: 10, kind: input, shape index: {}]   ;;  %s3149_s11 = inlined_call_operand.vmem [shape: f32[256,128], index: 11, kind: output, shape index: {}]  }
   0x1   :  { %s17_s19 = sshll.u32 %s3138_s0, 4  ;;  %s18_s19 = int_to_ptr.vmem [resolvable:$true] %s17_s19 }
   0x2   :  { %20 = dma.vmem_to_smem %s18_s19, 16, %s2421_s20, [#allocation5] }
   0x3   :  { %2399 = dma.done.wait [#allocation5], 16 }
   0x4   :  { %2400 = vsyncadd [#allocation5], 4294967280 }
   0x5   :  { %23 = sfence }
   0x6   :  { %s2486_s21 = smov 0   ;;  %s2488_s22 = smov 0  }
   0x7   :  { %s2490_s23 = smov 0   ;;  %s2492_s24 = smov 0  }
   0x8   :  { %s2494_s25 = smov 0  }
   0x9 LB: > { %s38_s0 = sadd.s32 1, %s2411_s23  ;;  %s41_s26 = sadd.s32 1, %s2415_s24  ;;  %s2419_s25 = sphi %s2494_s25, %s29_s25   ;;  %s2415_s24 = sphi %s2492_s24, %s3155_s24   ;;  %s2411_s23 = sphi %s2490_s23, %s3154_s23   ;;  %s2407_s22 = sphi %s2488_s22, %s3153_s22   ;;  %s2403_s21 = sphi %s2486_s21, %s3152_s21  }
   0xa   : > { %p39_p0 = scmp.ge.s32.totalorder %s38_s0, 8  ;;  %p2098_p1 = scmp.ge.s32.totalorder %s2419_s25, 1 }
   0xb   : > { %p345_p2 = scmp.lt.s32.totalorder %s2419_s25, 17 }
   0xc   : > { %s3157_s0 = smov (%p39_p0, %s38_s0), 0  ;;  %s3159_s26 = smov (!%p39_p0, %s41_s26), %s2415_s24 }
   0xd   : > { %p346_p3 = pnand %p2098_p1, %p345_p2  ;;  %p43_p4 = scmp.ge.s32.totalorder %s3159_s26, 2 }
   0xe   : > { %s2099_s27 = sshll.u32 (!%p346_p3), %s2407_s22, 4  ;;  %p2105_p6 = scmp.ne.s32.totalorder (!%p346_p3), %s2403_s21, 0 }
   0xf   : > { %s3161_s26 = smov (%p43_p4, %s3159_s26), 0  ;;  %349 = sbr.rel (%p346_p3) target bundleno = 1174 (0x496), region = 60 }
  0x10   : > { %p389_p5 = scmp.lt.s32.totalorder (!%p346_p3), %s2099_s27, 31 }
  0x14   : > { %s3163_s27 = smov (!%p389_p5, %s2099_s27), 31  ;;  %409 = sbr.rel (%p2105_p6) target bundleno = 247 (0xf7), region = 64 }
  0x15   : > { %s2100_s28 = sshll.u32 %s3163_s27, 3 }
  0x16   : > { %s2524_s12 = scalar_lea.vmem %s3139_s1, %s2100_s28  ;;  %s2529_s15 = scalar_lea.vmem %s3148_s10, %s2100_s28 }
  0x17   : > { %s2534_s18 = scalar_lea.vmem %s3149_s11, %s2100_s28 }
  0x19   : > { %v456_v0 = vld [vmem:[%s3140_s2 + $0xf0] sm:$0xff]  ;;  %v457_v1 = vld [vmem:[%s3140_s2 + $0xf8] sm:$0xff]  ;;  %v454_v2 = vld [vmem:[%s3140_s2 + $0xe0] sm:$0xff] }
  0x1a   : > { %2177 = vmatpush.msra.mxu2 %v456_v0  ;;  %2193 = vmatpush.msra.mxu3 %v457_v1  ;;  %v455_v3 = vld [vmem:[%s3140_s2 + $0xe8] sm:$0xff]  ;;  %v452_v4 = vld [vmem:[%s3140_s2 + $0xd0] sm:$0xff]  ;;  %v453_v5 = vld [vmem:[%s3140_s2 + $0xd8] sm:$0xff] }
  0x1b   : > { %458 = vmatpush.msra.mxu0 %v456_v0  ;;  %523 = vmatpush.msra.mxu1 %v457_v1  ;;  %v450_v6 = vld [vmem:[%s3140_s2 + $0xc0] sm:$0xff]  ;;  %v451_v7 = vld [vmem:[%s3140_s2 + $0xc8] sm:$0xff]  ;;  %v448_v8 = vld [vmem:[%s3140_s2 + $0xb0] sm:$0xff]  ;;  %v2422_v0 = vmov 0.0  }
  0x1c   : > { %2178 = vmatpush.msra.mxu2 %v454_v2  ;;  %2194 = vmatpush.msra.mxu3 %v455_v3  ;;  %v449_v9 = vld [vmem:[%s3140_s2 + $0xb8] sm:$0xff]  ;;  %v446_v10 = vld [vmem:[%s3140_s2 + $0xa0] sm:$0xff]  ;;  %v447_v11 = vld [vmem:[%s3140_s2 + $0xa8] sm:$0xff]  ;;  %620 = vst [vmem:[#allocation3] sm:$0xff] %v2422_v0 }
  0x1d   : > { %459 = vmatpush.msra.mxu0 %v454_v2  ;;  %524 = vmatpush.msra.mxu1 %v455_v3  ;;  %v444_v12 = vld [vmem:[%s3140_s2 + $0x90] sm:$0xff]  ;;  %v445_v13 = vld [vmem:[%s3140_s2 + $0x98] sm:$0xff]  ;;  %v442_v14 = vld [vmem:[%s3140_s2 + $0x80] sm:$0xff]  ;;  %621 = vst [vmem:[#allocation3 + $0x48] sm:$0xff] %v2422_v0 }
  0x1e   : > { %2179 = vmatpush.msra.mxu2 %v452_v4  ;;  %2195 = vmatpush.msra.mxu3 %v453_v5  ;;  %v443_v15 = vld [vmem:[%s3140_s2 + $0x88] sm:$0xff]  ;;  %v440_v16 = vld [vmem:[%s3140_s2 + $0x70] sm:$0xff]  ;;  %v441_v17 = vld [vmem:[%s3140_s2 + $0x78] sm:$0xff]  ;;  %622 = vst [vmem:[#allocation3 + $0x68] sm:$0xff] %v2422_v0 }
  0x1f   : > { %460 = vmatpush.msra.mxu0 %v452_v4  ;;  %525 = vmatpush.msra.mxu1 %v453_v5  ;;  %v438_v18 = vld [vmem:[%s3140_s2 + $0x60] sm:$0xff]  ;;  %v439_v19 = vld [vmem:[%s3140_s2 + $0x68] sm:$0xff]  ;;  %v436_v20 = vld [vmem:[%s3140_s2 + $0x50] sm:$0xff]  ;;  %623 = vst [vmem:[#allocation3 + $0x78] sm:$0xff] %v2422_v0 }
  0x20   : > { %2180 = vmatpush.msra.mxu2 %v450_v6  ;;  %2196 = vmatpush.msra.mxu3 %v451_v7  ;;  %v437_v21 = vld [vmem:[%s3140_s2 + $0x58] sm:$0xff]  ;;  %v434_v22 = vld [vmem:[%s3140_s2 + $0x40] sm:$0xff]  ;;  %v435_v23 = vld [vmem:[%s3140_s2 + $0x48] sm:$0xff]  ;;  %624 = vst [vmem:[#allocation3 + $0x8] sm:$0xff] %v2422_v0 }
  0x21   : > { %461 = vmatpush.msra.mxu0 %v450_v6  ;;  %526 = vmatpush.msra.mxu1 %v451_v7  ;;  %v432_v24 = vld [vmem:[%s3140_s2 + $0x30] sm:$0xff]  ;;  %v433_v25 = vld [vmem:[%s3140_s2 + $0x38] sm:$0xff]  ;;  %v430_v26 = vld [vmem:[%s3140_s2 + $0x20] sm:$0xff]  ;;  %625 = vst [vmem:[#allocation3 + $0x50] sm:$0xff] %v2422_v0 }
  0x22   : > { %2181 = vmatpush.msra.mxu2 %v448_v8  ;;  %2197 = vmatpush.msra.mxu3 %v449_v9  ;;  %v431_v27 = vld [vmem:[%s3140_s2 + $0x28] sm:$0xff]  ;;  %v428_v28 = vld [vmem:[%s3140_s2 + $0x10] sm:$0xff]  ;;  %v429_v29 = vld [vmem:[%s3140_s2 + $0x18] sm:$0xff]  ;;  %626 = vst [vmem:[#allocation3 + $0x40] sm:$0xff] %v2422_v0 }
  0x23   : > { %462 = vmatpush.msra.mxu0 %v448_v8  ;;  %527 = vmatpush.msra.mxu1 %v449_v9  ;;  %v426_v30 = vld [vmem:[%s3140_s2] sm:$0xff]  ;;  %v427_v31 = vld [vmem:[%s3140_s2 + $0x8] sm:$0xff]  ;;  %v420_v36 = vld [vmem:[%s2524_s12 + $0x50] sm:$0xff]  ;;  %627 = vst [vmem:[#allocation3 + $0x38] sm:$0xff] %v2422_v0 }
  0x24   : > { %2182 = vmatpush.msra.mxu2 %v446_v10  ;;  %2198 = vmatpush.msra.mxu3 %v447_v11  ;;  %v418_v32 = vld [vmem:[%s2524_s12 + $0x40] sm:$0xff]  ;;  %v419_v34 = vld [vmem:[%s2524_s12 + $0x48] sm:$0xff]  ;;  %v412_v37 = vld [vmem:[%s2524_s12 + $0x10] sm:$0xff]  ;;  %628 = vst [vmem:[#allocation3 + $0x70] sm:$0xff] %v2422_v0 }
  0x25   : > { %463 = vmatpush.msra.mxu0 %v446_v10  ;;  %528 = vmatpush.msra.mxu1 %v447_v11  ;;  %v410_v33 = vld [vmem:[%s2524_s12] sm:$0xff]  ;;  %v411_v35 = vld [vmem:[%s2524_s12 + $0x8] sm:$0xff]  ;;  %v421_v38 = vld [vmem:[%s2524_s12 + $0x58] sm:$0xff]  ;;  %629 = vst [vmem:[#allocation3 + $0x60] sm:$0xff] %v2422_v0 }
  0x26   : > { %2183 = vmatpush.msra.mxu2 %v444_v12  ;;  %2199 = vmatpush.msra.mxu3 %v445_v13  ;;  %v413_v39 = vld [vmem:[%s2524_s12 + $0x18] sm:$0xff]  ;;  %v422_v40 = vld [vmem:[%s2524_s12 + $0x60] sm:$0xff]  ;;  %v423_v42 = vld [vmem:[%s2524_s12 + $0x68] sm:$0xff]  ;;  %630 = vst [vmem:[#allocation3 + $0x18] sm:$0xff] %v2422_v0 }
  0x27   : > { %464 = vmatpush.msra.mxu0 %v444_v12  ;;  %529 = vmatpush.msra.mxu1 %v445_v13  ;;  %v414_v41 = vld [vmem:[%s2524_s12 + $0x20] sm:$0xff]  ;;  %v415_v43 = vld [vmem:[%s2524_s12 + $0x28] sm:$0xff]  ;;  %v424_v44 = vld [vmem:[%s2524_s12 + $0x70] sm:$0xff]  ;;  %631 = vst [vmem:[#allocation3 + $0x20] sm:$0xff] %v2422_v0 }
  0x28   : > { %2184 = vmatpush.msra.mxu2 %v442_v14  ;;  %2200 = vmatpush.msra.mxu3 %v443_v15  ;;  %v416_v45 = vld [vmem:[%s2524_s12 + $0x30] sm:$0xff]  ;;  %v425_v46 = vld [vmem:[%s2524_s12 + $0x78] sm:$0xff]  ;;  %632 = vst [vmem:[#allocation3 + $0x10] sm:$0xff] %v2422_v0 }
  0x29   : > { %465 = vmatpush.msra.mxu0 %v442_v14  ;;  %530 = vmatpush.msra.mxu1 %v443_v15  ;;  %v417_v47 = vld [vmem:[%s2524_s12 + $0x38] sm:$0xff]  ;;  %633 = vst [vmem:[#allocation3 + $0x30] sm:$0xff] %v2422_v0 }
  0x2a   : > { %2185 = vmatpush.msra.mxu2 %v440_v16  ;;  %2201 = vmatpush.msra.mxu3 %v441_v17  ;;  %634 = vst [vmem:[#allocation3 + $0x28] sm:$0xff] %v2422_v0 }
  0x2b   : > { %466 = vmatpush.msra.mxu0 %v440_v16  ;;  %531 = vmatpush.msra.mxu1 %v441_v17  ;;  %635 = vst [vmem:[#allocation3 + $0x58] sm:$0xff] %v2422_v0 }
  0x2c   : > { %2186 = vmatpush.msra.mxu2 %v438_v18  ;;  %2202 = vmatpush.msra.mxu3 %v439_v19  ;;  %636 = vst [vmem:[#allocation4 + $0x18] sm:$0xff] %v2422_v0 }
  0x2d   : > { %467 = vmatpush.msra.mxu0 %v438_v18  ;;  %532 = vmatpush.msra.mxu1 %v439_v19  ;;  %637 = vst [vmem:[#allocation4 + $0x10] sm:$0xff] %v2422_v0 }
  0x2e   : > { %2187 = vmatpush.msra.mxu2 %v436_v20  ;;  %2203 = vmatpush.msra.mxu3 %v437_v21  ;;  %638 = vst [vmem:[#allocation4 + $0x48] sm:$0xff] %v2422_v0 }
  0x2f   : > { %468 = vmatpush.msra.mxu0 %v436_v20  ;;  %533 = vmatpush.msra.mxu1 %v437_v21  ;;  %639 = vst [vmem:[#allocation4 + $0x70] sm:$0xff] %v2422_v0 }
  0x30   : > { %2188 = vmatpush.msra.mxu2 %v434_v22  ;;  %2204 = vmatpush.msra.mxu3 %v435_v23  ;;  %640 = vst [vmem:[#allocation4 + $0x8] sm:$0xff] %v2422_v0 }
  0x31   : > { %469 = vmatpush.msra.mxu0 %v434_v22  ;;  %534 = vmatpush.msra.mxu1 %v435_v23  ;;  %641 = vst [vmem:[#allocation4 + $0x40] sm:$0xff] %v2422_v0 }
  0x32   : > { %2189 = vmatpush.msra.mxu2 %v432_v24  ;;  %2205 = vmatpush.msra.mxu3 %v433_v25  ;;  %642 = vst [vmem:[#allocation4 + $0x68] sm:$0xff] %v2422_v0 }
  0x33   : > { %470 = vmatpush.msra.mxu0 %v432_v24  ;;  %535 = vmatpush.msra.mxu1 %v433_v25  ;;  %643 = vst [vmem:[#allocation4 + $0x58] sm:$0xff] %v2422_v0 }
  0x34   : > { %2190 = vmatpush.msra.mxu2 %v430_v26  ;;  %2206 = vmatpush.msra.mxu3 %v431_v27  ;;  %644 = vst [vmem:[#allocation4 + $0x28] sm:$0xff] %v2422_v0 }
  0x35   : > { %471 = vmatpush.msra.mxu0 %v430_v26  ;;  %536 = vmatpush.msra.mxu1 %v431_v27  ;;  %645 = vst [vmem:[#allocation4] sm:$0xff] %v2422_v0 }
  0x36   : > { %2191 = vmatpush.msra.mxu2 %v428_v28  ;;  %2207 = vmatpush.msra.mxu3 %v429_v29  ;;  %646 = vst [vmem:[#allocation4 + $0x38] sm:$0xff] %v2422_v0 }
  0x37   : > { %472 = vmatpush.msra.mxu0 %v428_v28  ;;  %537 = vmatpush.msra.mxu1 %v429_v29  ;;  %647 = vst [vmem:[#allocation4 + $0x78] sm:$0xff] %v2422_v0 }
  0x38   : > { %2192 = vmatpush.msra.mxu2 %v426_v30  ;;  %2208 = vmatpush.msra.mxu3 %v427_v31  ;;  %648 = vst [vmem:[#allocation4 + $0x30] sm:$0xff] %v2422_v0 }
  0x39   : > { %498 = vmatmul.f32.vlgmr.msra.gmra.mxu2 %v418_v32  ;;  %563 = vmatmul.f32.vlgmr.msra.gmra.mxu3 %v418_v32  ;;  %649 = vst [vmem:[#allocation4 + $0x50] sm:$0xff] %v2422_v0 }
  0x3a   : > { %473 = vmatpush.msra.mxu0 %v426_v30  ;;  %538 = vmatpush.msra.mxu1 %v427_v31  ;;  %650 = vst [vmem:[#allocation4 + $0x20] sm:$0xff] %v2422_v0 }
  0x3b   : > { %474 = vmatmul.f32.vlgmr.msra.gmra.mxu0 %v410_v33  ;;  %539 = vmatmul.f32.vlgmr.msra.gmra.mxu1 %v410_v33  ;;  %651 = vst [vmem:[#allocation4 + $0x60] sm:$0xff] %v2422_v0 }
  0x41   : > { %501 = vmatmul.f32.gmra.mxu2 %v419_v34  ;;  %566 = vmatmul.f32.gmra.mxu3 %v419_v34 }
  0x43   : > { %477 = vmatmul.f32.gmra.mxu0 %v411_v35  ;;  %542 = vmatmul.f32.gmra.mxu1 %v411_v35 }
  0x49   : > { %504 = vmatmul.f32.gmra.mxu2 %v420_v36  ;;  %569 = vmatmul.f32.gmra.mxu3 %v420_v36 }
  0x4b   : > { %480 = vmatmul.f32.gmra.mxu0 %v412_v37  ;;  %545 = vmatmul.f32.gmra.mxu1 %v412_v37 }
  0x51   : > { %507 = vmatmul.f32.gmra.mxu2 %v421_v38  ;;  %572 = vmatmul.f32.gmra.mxu3 %v421_v38 }
  0x53   : > { %483 = vmatmul.f32.gmra.mxu0 %v413_v39  ;;  %548 = vmatmul.f32.gmra.mxu1 %v413_v39 }
  0x59   : > { %510 = vmatmul.f32.gmra.mxu2 %v422_v40  ;;  %575 = vmatmul.f32.gmra.mxu3 %v422_v40 }
  0x5b   : > { %486 = vmatmul.f32.gmra.mxu0 %v414_v41  ;;  %551 = vmatmul.f32.gmra.mxu1 %v414_v41 }
  0x61   : > { %513 = vmatmul.f32.gmra.mxu2 %v423_v42  ;;  %578 = vmatmul.f32.gmra.mxu3 %v423_v42 }
  0x63   : > { %489 = vmatmul.f32.gmra.mxu0 %v415_v43  ;;  %554 = vmatmul.f32.gmra.mxu1 %v415_v43 }
  0x69   : > { %516 = vmatmul.f32.gmra.mxu2 %v424_v44  ;;  %581 = vmatmul.f32.gmra.mxu3 %v424_v44 }
  0x6b   : > { %492 = vmatmul.f32.gmra.mxu0 %v416_v45  ;;  %557 = vmatmul.f32.gmra.mxu1 %v416_v45 }
  0x71   : > { %519 = vmatmul.f32.gmra.mxu2 %v425_v46  ;;  %584 = vmatmul.f32.gmra.mxu3 %v425_v46 }
  0x73   : > { %495 = vmatmul.f32.gmra.mxu0 %v417_v47  ;;  %560 = vmatmul.f32.gmra.mxu1 %v417_v47 }
  0xb8   : > { %v475_v48 = vpop.f32.mrf.mxu0  ;;  %v540_v49 = vpop.f32.mrf.mxu1 }
  0xb9   : > { %588 = vst [vmem:[#allocation2 + $0xb0] sm:$0xff] %v475_v48 }
  0xba   : > { %589 = vst [vmem:[#allocation2] sm:$0xff] %v540_v49 }
  0xbc   : > { %v499_v50 = vpop.f32.mrf.mxu2  ;;  %v564_v51 = vpop.f32.mrf.mxu3 }
  0xbd   : > { %604 = vst [vmem:[#allocation2 + $0x38] sm:$0xff] %v499_v50 }
  0xbe   : > { %605 = vst [vmem:[#allocation2 + $0x58] sm:$0xff] %v564_v51 }
  0xc0   : > { %v478_v52 = vpop.f32.mrf.mxu0  ;;  %v543_v53 = vpop.f32.mrf.mxu1 }
  0xc1   : > { %590 = vst [vmem:[#allocation2 + $0xd8] sm:$0xff] %v478_v52 }
  0xc2   : > { %591 = vst [vmem:[#allocation2 + $0x18] sm:$0xff] %v543_v53 }
  0xc4   : > { %v502_v54 = vpop.f32.mrf.mxu2  ;;  %v567_v55 = vpop.f32.mrf.mxu3 }
  0xc5   : > { %606 = vst [vmem:[#allocation2 + $0x40] sm:$0xff] %v502_v54 }
  0xc6   : > { %607 = vst [vmem:[#allocation2 + $0xc8] sm:$0xff] %v567_v55 }
  0xc8   : > { %v481_v56 = vpop.f32.mrf.mxu0  ;;  %v546_v57 = vpop.f32.mrf.mxu1 }
  0xc9   : > { %592 = vst [vmem:[#allocation2 + $0x50] sm:$0xff] %v481_v56 }
  0xca   : > { %593 = vst [vmem:[#allocation2 + $0x68] sm:$0xff] %v546_v57 }
  0xcc   : > { %v505_v58 = vpop.f32.mrf.mxu2  ;;  %v570_v59 = vpop.f32.mrf.mxu3 }
  0xcd   : > { %608 = vst [vmem:[#allocation2 + $0xe0] sm:$0xff] %v505_v58 }
  0xce   : > { %609 = vst [vmem:[#allocation2 + $0x90] sm:$0xff] %v570_v59 }
  0xd0   : > { %v484_v60 = vpop.f32.mrf.mxu0  ;;  %v549_v61 = vpop.f32.mrf.mxu1 }
  0xd1   : > { %594 = vst [vmem:[#allocation2 + $0x30] sm:$0xff] %v484_v60 }
  0xd2   : > { %595 = vst [vmem:[#allocation2 + $0x48] sm:$0xff] %v549_v61 }
  0xd4   : > { %v508_v62 = vpop.f32.mrf.mxu2  ;;  %v573_v63 = vpop.f32.mrf.mxu3 }
  0xd5   : > { %610 = vst [vmem:[#allocation2 + $0x70] sm:$0xff] %v508_v62 }
  0xd6   : > { %611 = vst [vmem:[#allocation2 + $0xc0] sm:$0xff] %v573_v63 }
  0xd8   : > { %v487_v1 = vpop.f32.mrf.mxu0  ;;  %v552_v2 = vpop.f32.mrf.mxu1 }
  0xd9   : > { %596 = vst [vmem:[#allocation2 + $0x80] sm:$0xff] %v487_v1 }
  0xda   : > { %597 = vst [vmem:[#allocation2 + $0x88] sm:$0xff] %v552_v2 }
  0xdc   : > { %v511_v3 = vpop.f32.mrf.mxu2  ;;  %v576_v4 = vpop.f32.mrf.mxu3 }
  0xdd   : > { %612 = vst [vmem:[#allocation2 + $0xa8] sm:$0xff] %v511_v3 }
  0xde   : > { %613 = vst [vmem:[#allocation2 + $0xd0] sm:$0xff] %v576_v4 }
  0xe0   : > { %v490_v5 = vpop.f32.mrf.mxu0  ;;  %v555_v6 = vpop.f32.mrf.mxu1 }
  0xe1   : > { %598 = vst [vmem:[#allocation2 + $0xe8] sm:$0xff] %v490_v5 }
  0xe2   : > { %599 = vst [vmem:[#allocation2 + $0xb8] sm:$0xff] %v555_v6 }
  0xe4   : > { %v514_v7 = vpop.f32.mrf.mxu2  ;;  %v579_v8 = vpop.f32.mrf.mxu3 }
  0xe5   : > { %614 = vst [vmem:[#allocation2 + $0x10] sm:$0xff] %v514_v7 }
  0xe6   : > { %615 = vst [vmem:[#allocation2 + $0x28] sm:$0xff] %v579_v8 }
  0xe8   : > { %v493_v9 = vpop.f32.mrf.mxu0  ;;  %v558_v10 = vpop.f32.mrf.mxu1 }
  0xe9   : > { %600 = vst [vmem:[#allocation2 + $0x60] sm:$0xff] %v493_v9 }
  0xea   : > { %601 = vst [vmem:[#allocation2 + $0xf0] sm:$0xff] %v558_v10 }
  0xec   : > { %v517_v11 = vpop.f32.mrf.mxu2  ;;  %v582_v12 = vpop.f32.mrf.mxu3 }
  0xed   : > { %616 = vst [vmem:[#allocation2 + $0xa0] sm:$0xff] %v517_v11 }
  0xee   : > { %617 = vst [vmem:[#allocation2 + $0xf8] sm:$0xff] %v582_v12 }
  0xf0   : > { %v496_v13 = vpop.f32.mrf.mxu0  ;;  %v561_v14 = vpop.f32.mrf.mxu1 }
  0xf1   : > { %602 = vst [vmem:[#allocation2 + $0x8] sm:$0xff] %v496_v13 }
  0xf2   : > { %603 = vst [vmem:[#allocation2 + $0x78] sm:$0xff] %v561_v14 }
  0xf4   : > { %v520_v15 = vpop.f32.mrf.mxu2  ;;  %v585_v16 = vpop.f32.mrf.mxu3 }
  0xf5   : > { %618 = vst [vmem:[#allocation2 + $0x20] sm:$0xff] %v520_v15 }
  0xf6   : > { %619 = vst [vmem:[#allocation2 + $0x98] sm:$0xff] %v585_v16 }
  0xf7 PF: > { %s2106_s30 = sshll.u32 %s2407_s22, 3 }
  0xf8   : > { %s653_s13 = sadd.s32 %s2403_s21, %s2106_s30 }
  0xf9   : > { %s654_s14 = sld [smem:[#allocation6 + %s653_s13]] }
  0xff   : > { %p2107_p7 = scmp.le.s32.totalorder %s654_s14, 0 }
 0x100   : > { %s2684_s28 = sshll.u32 (!%p2107_p7), %s2403_s21, 7  ;;  %s2695_s22 = sshll.u32 (!%p2107_p7), %s2403_s21, 4 }
 0x101   : > { %658 = sbr.rel (%p2107_p7) target bundleno = 975 (0x3cf), region = 68  ;;  %s2690_s19 = scalar_lea.vmem (!%p2107_p7), %s3142_s4, %s2684_s28 }
 0x102   : > { %s2702_s29 = scalar_lea.vmem (!%p2107_p7), %s3143_s5, %s2684_s28  ;;  %s2708_s14 = scalar_lea.vmem (!%p2107_p7), %s3144_s6, %s2695_s22 }
 0x103   : > { %s2743_s20 = scalar_lea.vmem (!%p2107_p7), %s3145_s7, %s2695_s22  ;;  %s2812_s27 = scalar_lea.vmem (!%p2107_p7), %s3146_s8, %s2684_s28 }
 0x106   : > { %v692_v17 = vld [vmem:[%s2690_s19 + $0x78] sm:$0xff]  ;;  %v691_v18 = vld [vmem:[%s2690_s19 + $0x70] sm:$0xff]  ;;  %v690_v19 = vld [vmem:[%s2690_s19 + $0x68] sm:$0xff]  ;;  %vm844_vm0 = vcmask 130048   ;;  %v1474_v8 = vlaneseq  ;;  %v1476_v10 = vstv %s2403_s21  ;;  %vm1510_vm1 = vcmask 64512  }
 0x107   : > { %693 = vmatpush.msra.mxu0 %v692_v17  ;;  %v689_v20 = vld [vmem:[%s2690_s19 + $0x60] sm:$0xff]  ;;  %v774_v21 = vld [vmem:[%s2702_s29 + $0x78] sm:$0xff]  ;;  %v773_v22 = vld [vmem:[%s2702_s29 + $0x70] sm:$0xff] }
 0x108   : > { %v688_v23 = vld [vmem:[%s2690_s19 + $0x58] sm:$0xff]  ;;  %775 = vmatpush.msra.mxu1 %v774_v21  ;;  %v843_v24 = vld [vmem:[%s2708_s14 + $0x8] sm:$0xff]  ;;  %v687_v26 = vld [vmem:[%s2690_s19 + $0x50] sm:$0xff]  ;;  %v1475_v9 = vand.u32 127, %v1474_v8 }
 0x109   : > { %694 = vmatpush.msra.mxu0 %v691_v18  ;;  %v772_v25 = vld [vmem:[%s2702_s29 + $0x68] sm:$0xff]  ;;  %2209 = vmatpush.msra.mxu2 %v843_v24  ;;  %v771_v27 = vld [vmem:[%s2702_s29 + $0x60] sm:$0xff]  ;;  %v770_v29 = vld [vmem:[%s2702_s29 + $0x58] sm:$0xff] }
 0x10a   : > { %776 = vmatpush.msra.mxu1 %v773_v22  ;;  %v686_v28 = vld [vmem:[%s2690_s19 + $0x48] sm:$0xff]  ;;  %v685_v30 = vld [vmem:[%s2690_s19 + $0x40] sm:$0xff]  ;;  %v769_v31 = vld [vmem:[%s2702_s29 + $0x50] sm:$0xff]  ;;  %vm2770_vm2 = vcmp.eq.s32.totalorder %v1475_v9, %v1476_v10 }
 0x10b   : > { %695 = vmatpush.msra.mxu0 %v690_v19  ;;  %v684_v32 = vld [vmem:[%s2690_s19 + $0x38] sm:$0xff]  ;;  %v768_v33 = vld [vmem:[%s2702_s29 + $0x48] sm:$0xff]  ;;  %v683_v34 = vld [vmem:[%s2690_s19 + $0x30] sm:$0xff] }
 0x10c   : > { %777 = vmatpush.msra.mxu1 %v772_v25  ;;  %v767_v35 = vld [vmem:[%s2702_s29 + $0x40] sm:$0xff]  ;;  %v682_v36 = vld [vmem:[%s2690_s19 + $0x28] sm:$0xff]  ;;  %v766_v37 = vld [vmem:[%s2702_s29 + $0x38] sm:$0xff] }
 0x10d   : > { %696 = vmatpush.msra.mxu0 %v689_v20  ;;  %v681_v38 = vld [vmem:[%s2690_s19 + $0x20] sm:$0xff]  ;;  %v765_v39 = vld [vmem:[%s2702_s29 + $0x30] sm:$0xff]  ;;  %v680_v40 = vld [vmem:[%s2690_s19 + $0x18] sm:$0xff] }
 0x10e   : > { %778 = vmatpush.msra.mxu1 %v771_v27  ;;  %v764_v41 = vld [vmem:[%s2702_s29 + $0x28] sm:$0xff]  ;;  %v679_v42 = vld [vmem:[%s2690_s19 + $0x10] sm:$0xff]  ;;  %v763_v43 = vld [vmem:[%s2702_s29 + $0x20] sm:$0xff] }
 0x10f   : > { %697 = vmatpush.msra.mxu0 %v688_v23  ;;  %v678_v44 = vld [vmem:[%s2690_s19 + $0x8] sm:$0xff]  ;;  %v762_v45 = vld [vmem:[%s2702_s29 + $0x18] sm:$0xff]  ;;  %v677_v46 = vld [vmem:[%s2690_s19] sm:$0xff] }
 0x110   : > { %779 = vmatpush.msra.mxu1 %v770_v29  ;;  %v659_v47 = vld [vmem:[%s2524_s12] sm:$0xff]  ;;  %v761_v48 = vld [vmem:[%s2702_s29 + $0x10] sm:$0xff]  ;;  %v760_v49 = vld [vmem:[%s2702_s29 + $0x8] sm:$0xff] }
 0x111   : > { %698 = vmatpush.msra.mxu0 %v687_v26  ;;  %v960_v50 = vld [vmem:[%s2743_s20 + $0x8] sm:$0xff]  ;;  %v759_v51 = vld [vmem:[%s2702_s29] sm:$0xff]  ;;  %v661_v53 = vld [vmem:[%s2524_s12 + $0x10] sm:$0xff]  ;;  %s2975_s29 = scalar_lea.vmem %s3147_s9, %s2695_s22 }
 0x112   : > { %780 = vmatpush.msra.mxu1 %v769_v31  ;;  %2211 = vmatpush.msra.mxu3 %v960_v50  ;;  %v660_v52 = vld [vmem:[%s2524_s12 + $0x8] sm:$0xff]  ;;  %v662_v54 = vld [vmem:[%s2524_s12 + $0x18] sm:$0xff]  ;;  %v663_v55 = vld [vmem:[%s2524_s12 + $0x20] sm:$0xff] }
 0x113   : > { %699 = vmatpush.msra.mxu0 %v686_v28  ;;  %v842_v56 = vld [vmem:[%s2708_s14] sm:$0xff]  ;;  %v664_v57 = vld [vmem:[%s2524_s12 + $0x28] sm:$0xff]  ;;  %v665_v58 = vld [vmem:[%s2524_s12 + $0x30] sm:$0xff] }
 0x114   : > { %781 = vmatpush.msra.mxu1 %v768_v33  ;;  %2210 = vmatpush.msra.mxu2 %v842_v56  ;;  %v666_v59 = vld [vmem:[%s2524_s12 + $0x38] sm:$0xff]  ;;  %v667_v60 = vld [vmem:[%s2524_s12 + $0x40] sm:$0xff]  ;;  %v668_v62 = vld [vmem:[%s2524_s12 + $0x48] sm:$0xff] }
 0x115   : > { %700 = vmatpush.msra.mxu0 %v685_v30  ;;  %v959_v61 = vld [vmem:[%s2743_s20] sm:$0xff]  ;;  %v669_v63 = vld [vmem:[%s2524_s12 + $0x50] sm:$0xff]  ;;  %v670_v0 = vld [vmem:[%s2524_s12 + $0x58] sm:$0xff] }
 0x116   : > { %782 = vmatpush.msra.mxu1 %v767_v35  ;;  %2212 = vmatpush.msra.mxu3 %v959_v61  ;;  %v671_v1 = vld [vmem:[%s2524_s12 + $0x60] sm:$0xff]  ;;  %v672_v2 = vld [vmem:[%s2524_s12 + $0x68] sm:$0xff]  ;;  %v673_v3 = vld [vmem:[%s2524_s12 + $0x70] sm:$0xff] }
 0x117   : > { %701 = vmatpush.msra.mxu0 %v684_v32  ;;  %v674_v4 = vld [vmem:[%s2524_s12 + $0x78] sm:$0xff]  ;;  %v1478_v11 = vld [vmem:[%s2529_s15] sm:$0xff]  ;;  %v1479_v17 = vld [vmem:[%s2529_s15 + $0x8] sm:$0xff] }
 0x118   : > { %783 = vmatpush.msra.mxu1 %v766_v37  ;;  %v1494_v14 = vsel %vm2770_vm2, %v1478_v11, 0.0  ;;  %v1495_v18 = vsel %vm2770_vm2, %v1479_v17, 0.0  ;;  %v1480_v22 = vld [vmem:[%s2529_s15 + $0x10] sm:$0xff]  ;;  %v1481_v27 = vld [vmem:[%s2529_s15 + $0x18] sm:$0xff]  ;;  %v1482_v32 = vld [vmem:[%s2529_s15 + $0x20] sm:$0xff] }
 0x119   : > { %702 = vmatpush.msra.mxu0 %v683_v34  ;;  %v1511_v15 = vsel %vm1510_vm1, %v1494_v14, 0.0  ;;  %v1514_v19 = vsel %vm1510_vm1, %v1495_v18, 0.0  ;;  %v1496_v23 = vsel %vm2770_vm2, %v1480_v22, 0.0  ;;  %v1497_v28 = vsel %vm2770_vm2, %v1481_v27, 0.0  ;;  %v1483_v37 = vld [vmem:[%s2529_s15 + $0x28] sm:$0xff]  ;;  %v1488_v8 = vld [vmem:[%s2529_s15 + $0x50] sm:$0xff] }
 0x11a   : > { %784 = vmatpush.msra.mxu1 %v765_v39  ;;  %1512 = vadd.xlane.f32.xlu0 %v1511_v15  ;;  %v1520_v29 = vsel %vm1510_vm1, %v1497_v28, 0.0  ;;  %v1498_v33 = vsel %vm2770_vm2, %v1482_v32, 0.0  ;;  %v1504_v9 = vsel %vm2770_vm2, %v1488_v8, 0.0  ;;  %v1489_v14 = vld [vmem:[%s2529_s15 + $0x58] sm:$0xff]  ;;  %v1491_v27 = vld [vmem:[%s2529_s15 + $0x68] sm:$0xff]  ;;  %v1074_v32 = vld [vmem:[#allocation2 + $0xb0] sm:$0xff] }
 0x11b   : > { %703 = vmatpush.msra.mxu0 %v682_v36  ;;  %v1523_v34 = vsel %vm1510_vm1, %v1498_v33, 0.0  ;;  %v1541_v10 = vsel %vm1510_vm1, %v1504_v9, 0.0  ;;  %v1505_v15 = vsel %vm2770_vm2, %v1489_v14, 0.0  ;;  %v1631_v22 = vld [vmem:[%s2812_s27 + $0x38] sm:$0xff]  ;;  %v1507_v28 = vsel %vm2770_vm2, %v1491_v27, 0.0  ;;  %v1077_v12 = vld [vmem:[#allocation2 + $0x30] sm:$0xff] }
 0x11c   : > { %785 = vmatpush.msra.mxu1 %v764_v41  ;;  %1524 = vadd.xlane.f32.xlu2 %v1523_v34  ;;  %v1627_v33 = vld [vmem:[%s2812_s27 + $0x18] sm:$0xff]  ;;  %v1106_v9 = vld [vmem:[#allocation2] sm:$0xff] }
 0x11d   : > { %704 = vmatpush.msra.mxu0 %v681_v38  ;;  %v1499_v38 = vsel %vm2770_vm2, %v1483_v37, 0.0  ;;  %v1625_v37 = vld [vmem:[%s2812_s27 + $0x8] sm:$0xff] }
 0x11e   : > { %786 = vmatpush.msra.mxu1 %v763_v43  ;;  %v1526_v39 = vsel %vm1510_vm1, %v1499_v38, 0.0  ;;  %v1638_v43 = vld [vmem:[%s2812_s27 + $0x70] sm:$0xff] }
 0x11f   : > { %705 = vmatpush.msra.mxu0 %v680_v40  ;;  %v1492_v38 = vld [vmem:[%s2529_s15 + $0x70] sm:$0xff] }
 0x120   : > { %787 = vmatpush.msra.mxu1 %v762_v45 }
 0x121   : > { %706 = vmatpush.msra.mxu0 %v679_v42  ;;  %v1639_v42 = vld [vmem:[%s2812_s27 + $0x78] sm:$0xff] }
 0x122   : > { %788 = vmatpush.msra.mxu1 %v761_v48  ;;  %1515 = vadd.xlane.f32.xlu0 %v1514_v19  ;;  %v1637_v48 = vld [vmem:[%s2812_s27 + $0x68] sm:$0xff]  ;;  %v1490_v19 = vld [vmem:[%s2529_s15 + $0x60] sm:$0xff] }
 0x123   : > { %707 = vmatpush.msra.mxu0 %v678_v44  ;;  %1640 = vmatpush.msrb.mxu2 %v1639_v42  ;;  %v1624_v42 = vld [vmem:[%s2812_s27] sm:$0xff] }
 0x124   : > { %789 = vmatpush.msra.mxu1 %v760_v49  ;;  %1527 = vadd.xlane.f32.xlu2 %v1526_v39 }
 0x125   : > { %708 = vmatpush.msra.mxu0 %v677_v46  ;;  %1641 = vmatpush.msrb.mxu2 %v1638_v43  ;;  %v1484_v46 = vld [vmem:[%s2529_s15 + $0x30] sm:$0xff]  ;;  %v1075_v43 = vld [vmem:[#allocation2 + $0xd8] sm:$0xff] }
 0x126   : > { %709 = vmatmul.f32.vlgmr.msra.gmra.mxu0 %v659_v47  ;;  %790 = vmatpush.msra.mxu1 %v759_v51 }
 0x127   : > { %907 = vmatpush.msrb.mxu0 %v843_v24  ;;  %791 = vmatmul.f32.vlgmr.msra.gmra.mxu1 %v659_v47  ;;  %v1517_v24 = vsel %vm1510_vm1, %v1496_v23, 0.0  ;;  %v1500_v47 = vsel %vm2770_vm2, %v1484_v46, 0.0  ;;  %v1493_v46 = vld [vmem:[%s2529_s15 + $0x78] sm:$0xff] }
 0x128   : > { %1023 = vmatpush.msrb.mxu1 %v960_v50  ;;  %1518 = vadd.xlane.f32.xlu1 %v1517_v24  ;;  %v1529_v49 = vsel %vm1510_vm1, %v1500_v47, 0.0  ;;  %v1630_v24 = vld [vmem:[%s2812_s27 + $0x30] sm:$0xff] }
 0x129   : > { %908 = vmatpush.msrb.mxu0 %v842_v56  ;;  %1642 = vmatpush.msrb.mxu2 %v1637_v48 }
 0x12a   : > { %1024 = vmatpush.msrb.mxu1 %v959_v61  ;;  %1530 = vadd.xlane.f32.xlu0 %v1529_v49  ;;  %v1509_v49 = vsel %vm2770_vm2, %v1493_v46, 0.0 }
 0x12e   : > { %712 = vmatmul.f32.gmra.mxu0 %v660_v52 }
 0x12f   : > { %794 = vmatmul.f32.gmra.mxu1 %v660_v52  ;;  %v1636_v52 = vld [vmem:[%s2812_s27 + $0x60] sm:$0xff] }
 0x130   : > { %1521 = vadd.xlane.f32.xlu1 %v1520_v29  ;;  %1643 = vmatpush.msrb.mxu2 %v1636_v52  ;;  %v1550_v29 = vsel %vm1510_vm1, %v1507_v28, 0.0  ;;  %v1076_v52 = vld [vmem:[#allocation2 + $0x50] sm:$0xff] }
 0x136   : > { %715 = vmatmul.f32.gmra.mxu0 %v661_v53 }
 0x137   : > { %797 = vmatmul.f32.gmra.mxu1 %v661_v53  ;;  %v1485_v53 = vld [vmem:[%s2529_s15 + $0x38] sm:$0xff] }
 0x13e   : > { %718 = vmatmul.f32.gmra.mxu0 %v662_v54 }
 0x13f   : > { %800 = vmatmul.f32.gmra.mxu1 %v662_v54  ;;  %v1501_v54 = vsel %vm2770_vm2, %v1485_v53, 0.0 }
 0x140   : > { %v1532_v56 = vsel %vm1510_vm1, %v1501_v54, 0.0 }
 0x141   : > { %1533 = vadd.xlane.f32.xlu1 %v1532_v56 }
 0x146   : > { %721 = vmatmul.f32.gmra.mxu0 %v663_v55 }
 0x147   : > { %803 = vmatmul.f32.gmra.mxu1 %v663_v55  ;;  %v1635_v55 = vld [vmem:[%s2812_s27 + $0x58] sm:$0xff] }
 0x148   : > { %1644 = vmatpush.msrb.mxu2 %v1635_v55 }
 0x149   : > { %1542 = vadd.xlane.f32.xlu1 %v1541_v10 }
 0x14e   : > { %724 = vmatmul.f32.gmra.mxu0 %v664_v57 }
 0x14f   : > { %806 = vmatmul.f32.gmra.mxu1 %v664_v57 }
 0x151   : > { %1551 = vadd.xlane.f32.xlu1 %v1550_v29 }
 0x156   : > { %727 = vmatmul.f32.gmra.mxu0 %v665_v58 }
 0x157   : > { %809 = vmatmul.f32.gmra.mxu1 %v665_v58 }
 0x15e   : > { %730 = vmatmul.f32.gmra.mxu0 %v666_v59 }
 0x15f   : > { %812 = vmatmul.f32.gmra.mxu1 %v666_v59  ;;  %v1486_v59 = vld [vmem:[%s2529_s15 + $0x40] sm:$0xff] }
 0x160   : > { %v1502_v61 = vsel %vm2770_vm2, %v1486_v59, 0.0 }
 0x166   : > { %733 = vmatmul.f32.gmra.mxu0 %v667_v60 }
 0x167   : > { %815 = vmatmul.f32.gmra.mxu1 %v667_v60  ;;  %v1634_v60 = vld [vmem:[%s2812_s27 + $0x50] sm:$0xff] }
 0x168   : > { %1645 = vmatpush.msrb.mxu2 %v1634_v60 }
 0x16e   : > { %736 = vmatmul.f32.gmra.mxu0 %v668_v62 }
 0x16f   : > { %818 = vmatmul.f32.gmra.mxu1 %v668_v62  ;;  %v1633_v62 = vld [vmem:[%s2812_s27 + $0x48] sm:$0xff] }
 0x170   : > { %1646 = vmatpush.msrb.mxu2 %v1633_v62 }
 0x176   : > { %739 = vmatmul.f32.gmra.mxu0 %v669_v63 }
 0x177   : > { %821 = vmatmul.f32.gmra.mxu1 %v669_v63  ;;  %v1535_v63 = vsel %vm1510_vm1, %v1502_v61, 0.0 }
 0x178   : > { %1536 = vadd.xlane.f32.xlu2 %v1535_v63 }
 0x17e   : > { %742 = vmatmul.f32.gmra.mxu0 %v670_v0 }
 0x17f   : > { %824 = vmatmul.f32.gmra.mxu1 %v670_v0 }
 0x186   : > { %745 = vmatmul.f32.gmra.mxu0 %v671_v1 }
 0x187   : > { %827 = vmatmul.f32.gmra.mxu1 %v671_v1 }
 0x18e   : > { %748 = vmatmul.f32.gmra.mxu0 %v672_v2 }
 0x18f   : > { %830 = vmatmul.f32.gmra.mxu1 %v672_v2  ;;  %v1487_v2 = vld [vmem:[%s2529_s15 + $0x48] sm:$0xff] }
 0x196   : > { %751 = vmatmul.f32.gmra.mxu0 %v673_v3 }
 0x197   : > { %833 = vmatmul.f32.gmra.mxu1 %v673_v3  ;;  %v1503_v3 = vsel %vm2770_vm2, %v1487_v2, 0.0 }
 0x19e   : > { %754 = vmatmul.f32.gmra.mxu0 %v674_v4 }
 0x19f   : > { %836 = vmatmul.f32.gmra.mxu1 %v674_v4  ;;  %v1632_v4 = vld [vmem:[%s2812_s27 + $0x40] sm:$0xff] }
 0x1a0   : > { %1647 = vmatpush.msrb.mxu2 %v1632_v4 }
 0x1a2   : > { %1648 = vmatpush.msrb.mxu2 %v1631_v22 }
 0x1a3   : > { %v710_v5 = vpop.f32.mrf.mxu0 }
 0x1a4   : > { %v792_v6 = vpop.f32.mrf.mxu1  ;;  %1649 = vmatpush.msrb.mxu2 %v1630_v24 }
 0x1a6   : > { %2110 = vmatmul.msk.f32.vlgmr.msrb.gmra.mxu0 %vm844_vm0, %v710_v5  ;;  %v1538_v5 = vsel %vm1510_vm1, %v1503_v3, 0.0 }
 0x1a7   : > { %2126 = vmatmul.msk.f32.vlgmr.msrb.gmra.mxu1 %vm844_vm0, %v792_v6  ;;  %1539 = vadd.xlane.f32.xlu0 %v1538_v5 }
 0x1ab   : > { %v713_v7 = vpop.f32.mrf.mxu0 }
 0x1ac   : > { %v795_v13 = vpop.f32.mrf.mxu1 }
 0x1ae   : > { %2111 = vmatmul.msk.f32.gmra.mxu0 %vm844_vm0, %v713_v7 }
 0x1af   : > { %2127 = vmatmul.msk.f32.gmra.mxu1 %vm844_vm0, %v795_v13 }
 0x1b3   : > { %v716_v16 = vpop.f32.mrf.mxu0 }
 0x1b4   : > { %v798_v20 = vpop.f32.mrf.mxu1 }
 0x1b6   : > { %2112 = vmatmul.msk.f32.gmra.mxu0 %vm844_vm0, %v716_v16  ;;  %v1544_v16 = vsel %vm1510_vm1, %v1505_v15, 0.0  ;;  %v1078_v15 = vld [vmem:[#allocation2 + $0x80] sm:$0xff] }
 0x1b7   : > { %2128 = vmatmul.msk.f32.gmra.mxu1 %vm844_vm0, %v798_v20  ;;  %1545 = vadd.xlane.f32.xlu2 %v1544_v16  ;;  %v1506_v20 = vsel %vm2770_vm2, %v1490_v19, 0.0  ;;  %v1513_v16 = vpop.xlane.xlu0 %1512 }
 0x1bb   : > { %v719_v21 = vpop.f32.mrf.mxu0 }
 0x1bc   : > { %v801_v25 = vpop.f32.mrf.mxu1 }
 0x1be   : > { %2113 = vmatmul.msk.f32.gmra.mxu0 %vm844_vm0, %v719_v21  ;;  %v1547_v21 = vsel %vm1510_vm1, %v1506_v20, 0.0 }
 0x1bf   : > { %2129 = vmatmul.msk.f32.gmra.mxu1 %vm844_vm0, %v801_v25  ;;  %1548 = vadd.xlane.f32.xlu0 %v1547_v21 }
 0x1c3   : > { %v722_v26 = vpop.f32.mrf.mxu0 }
 0x1c4   : > { %v804_v30 = vpop.f32.mrf.mxu1 }
 0x1c6   : > { %2114 = vmatmul.msk.f32.gmra.mxu0 %vm844_vm0, %v722_v26  ;;  %v1629_v26 = vld [vmem:[%s2812_s27 + $0x28] sm:$0xff] }
 0x1c7   : > { %2130 = vmatmul.msk.f32.gmra.mxu1 %vm844_vm0, %v804_v30  ;;  %1650 = vmatpush.msrb.mxu2 %v1629_v26  ;;  %v1628_v30 = vld [vmem:[%s2812_s27 + $0x20] sm:$0xff] }
 0x1c9   : > { %1651 = vmatpush.msrb.mxu2 %v1628_v30 }
 0x1cb   : > { %v725_v31 = vpop.f32.mrf.mxu0  ;;  %1652 = vmatpush.msrb.mxu2 %v1627_v33  ;;  %v1575_v33 = vld [vmem:[#allocation3] sm:$0xff] }
 0x1cc   : > { %v807_v35 = vpop.f32.mrf.mxu1 }
 0x1ce   : > { %2115 = vmatmul.msk.f32.gmra.mxu0 %vm844_vm0, %v725_v31 }
 0x1cf   : > { %2131 = vmatmul.msk.f32.gmra.mxu1 %vm844_vm0, %v807_v35  ;;  %v1626_v35 = vld [vmem:[%s2812_s27 + $0x10] sm:$0xff] }
 0x1d0   : > { %1653 = vmatpush.msrb.mxu2 %v1626_v35 }
 0x1d2   : > { %1654 = vmatpush.msrb.mxu2 %v1625_v37 }
 0x1d3   : > { %v728_v36 = vpop.f32.mrf.mxu0 }
 0x1d4   : > { %2116 = vmatmul.msk.f32.vlgmr.msra.gmra.mxu2 %vm844_vm0, %v728_v36  ;;  %v810_v40 = vpop.f32.mrf.mxu1 }
 0x1d5   : > { %2132 = vmatmul.msk.f32.vlgmr.msra.gmra.mxu3 %vm844_vm0, %v810_v40  ;;  %v1508_v40 = vsel %vm2770_vm2, %v1492_v38, 0.0  ;;  %1655 = vmatpush.msrb.mxu2 %v1624_v42  ;;  %v1079_v38 = vld [vmem:[#allocation2 + $0xe8] sm:$0xff] }
 0x1db   : > { %v731_v41 = vpop.f32.mrf.mxu0 }
 0x1dc   : > { %2117 = vmatmul.msk.f32.gmra.mxu2 %vm844_vm0, %v731_v41  ;;  %v813_v44 = vpop.f32.mrf.mxu1  ;;  %v1553_v41 = vsel %vm1510_vm1, %v1508_v40, 0.0 }
 0x1dd   : > { %2133 = vmatmul.msk.f32.gmra.mxu3 %vm844_vm0, %v813_v44  ;;  %1554 = vadd.xlane.f32.xlu2 %v1553_v41 }
 0x1e3   : > { %v734_v45 = vpop.f32.mrf.mxu0 }
 0x1e4   : > { %2118 = vmatmul.msk.f32.gmra.mxu2 %vm844_vm0, %v734_v45  ;;  %v816_v50 = vpop.f32.mrf.mxu1 }
 0x1e5   : > { %2134 = vmatmul.msk.f32.gmra.mxu3 %vm844_vm0, %v816_v50 }
 0x1eb   : > { %v737_v51 = vpop.f32.mrf.mxu0 }
 0x1ec   : > { %2119 = vmatmul.msk.f32.gmra.mxu2 %vm844_vm0, %v737_v51  ;;  %v819_v57 = vpop.f32.mrf.mxu1  ;;  %v1556_v51 = vsel %vm1510_vm1, %v1509_v49, 0.0 }
 0x1ed   : > { %2135 = vmatmul.msk.f32.gmra.mxu3 %vm844_vm0, %v819_v57  ;;  %1557 = vadd.xlane.f32.xlu0 %v1556_v51 }
 0x1f3   : > { %v740_v58 = vpop.f32.mrf.mxu0 }
 0x1f4   : > { %2120 = vmatmul.msk.f32.gmra.mxu2 %vm844_vm0, %v740_v58  ;;  %v822_v0 = vpop.f32.mrf.mxu1 }
 0x1f5   : > { %2136 = vmatmul.msk.f32.gmra.mxu3 %vm844_vm0, %v822_v0 }
 0x1fb   : > { %v743_v1 = vpop.f32.mrf.mxu0 }
 0x1fc   : > { %2121 = vmatmul.msk.f32.gmra.mxu2 %vm844_vm0, %v743_v1  ;;  %v825_v6 = vpop.f32.mrf.mxu1 }
 0x1fd   : > { %2137 = vmatmul.msk.f32.gmra.mxu3 %vm844_vm0, %v825_v6 }
 0x203   : > { %v746_v7 = vpop.f32.mrf.mxu0 }
 0x204   : > { %2122 = vmatmul.msk.f32.gmra.mxu2 %vm844_vm0, %v746_v7  ;;  %v828_v11 = vpop.f32.mrf.mxu1 }
 0x205   : > { %2138 = vmatmul.msk.f32.gmra.mxu3 %vm844_vm0, %v828_v11 }
 0x20b   : > { %v749_v13 = vpop.f32.mrf.mxu0 }
 0x20c   : > { %2123 = vmatmul.msk.f32.gmra.mxu2 %vm844_vm0, %v749_v13  ;;  %v831_v17 = vpop.f32.mrf.mxu1 }
 0x20d   : > { %2139 = vmatmul.msk.f32.gmra.mxu3 %vm844_vm0, %v831_v17 }
 0x213   : > { %v752_v18 = vpop.f32.mrf.mxu0 }
 0x214   : > { %2124 = vmatmul.msk.f32.gmra.mxu2 %vm844_vm0, %v752_v18  ;;  %v834_v23 = vpop.f32.mrf.mxu1 }
 0x215   : > { %2140 = vmatmul.msk.f32.gmra.mxu3 %vm844_vm0, %v834_v23 }
 0x21b   : > { %v755_v25 = vpop.f32.mrf.mxu0 }
 0x21c   : > { %2125 = vmatmul.msk.f32.gmra.mxu2 %vm844_vm0, %v755_v25  ;;  %v837_v31 = vpop.f32.mrf.mxu1 }
 0x21d   : > { %2141 = vmatmul.msk.f32.gmra.mxu3 %vm844_vm0, %v837_v31 }
 0x223   : > { %v910_v34 = vpop.f32.mrf.mxu0 }
 0x224   : > { %v1090_v36 = vadd.f32 %v1074_v32, %v910_v34  ;;  %v1026_v55 = vpop.f32.mrf.mxu1  ;;  %v1107_v34 = vld [vmem:[#allocation2 + $0x18] sm:$0xff] }
 0x225   : > { %v1122_v19 = vadd.f32 %v1106_v9, %v1026_v55 }
 0x226   : > { %v2142_v39 = vmul.f32 -1.442695, %v1090_v36 }
 0x228   : > { %2303 = vpow2.f32 %v2142_v39 }
 0x22b   : > { %v913_v44 = vpop.f32.mrf.mxu0 }
 0x22c   : > { %v2884_v45 = vadd.f32 %v1075_v43, %v913_v44  ;;  %v1029_v10 = vpop.f32.mrf.mxu1 }
 0x22d   : > { %v1123_v43 = vadd.f32 %v1107_v34, %v1029_v10  ;;  %v1577_v10 = vld [vmem:[#allocation3 + $0x68] sm:$0xff] }
 0x22e   : > { %v2304_v47 = vpop.eup %2303  ;;  %v2143_v48 = vmul.f32 -1.442695, %v2884_v45 }
 0x22f   : > { %v1186_v50 = vadd.f32 1.0, %v2304_v47 }
 0x230   : > { %2305 = vpow2.f32 %v2143_v48  ;;  %v1516_v48 = vpop.xlane.xlu0 %1515 }
 0x231   : > { %2307 = vrcp.f32 %v1186_v50  ;;  %v1213_v62 = vand.u32 2147483648, %v1186_v50  ;;  %v1211_v1 = vand.u32 2147483647, %v1186_v50  ;;  %vm1207_vm4 = vweird.f32 %v1186_v50 }
 0x233   : > { %v916_v53 = vpop.f32.mrf.mxu0  ;;  %v1214_v7 = vor.u32 1.1754944e-38, %v1213_v62  ;;  %vm1212_vm6 = vcmp.eq.f32.partialorder %v1211_v1, 8.507059e+37 }
 0x234   : > { %v2891_v54 = vadd.f32 %v1076_v52, %v916_v53  ;;  %v1032_v39 = vpop.f32.mrf.mxu1 }
 0x236   : > { %v2306_v56 = vpop.eup %2305  ;;  %v2144_v57 = vmul.f32 -1.442695, %v2891_v54 }
 0x237   : > { %v2308_v58 = vpop.eup %2307  ;;  %v1187_v59 = vadd.f32 1.0, %v2306_v56 }
 0x238   : > { %v1203_v60 = vmul.f32 %v2308_v58, %v1186_v50  ;;  %2309 = vpow2.f32 %v2144_v57  ;;  %vm1208_vm3 = vweird.f32 %v2308_v58 }
 0x239   : > { %2311 = vrcp.f32 %v1187_v59  ;;  %vm1209_vm5 = vmor %vm1207_vm4, %vm1208_vm3  ;;  %v1226_v20 = vand.u32 2147483647, %v1187_v59  ;;  %v1228_v21 = vand.u32 2147483648, %v1187_v59  ;;  %vm1222_vm8 = vweird.f32 %v1187_v59 }
 0x23a   : > { %v1204_v61 = vsub.f32 1.0, %v1203_v60  ;;  %v1108_v60 = vld [vmem:[#allocation2 + $0x68] sm:$0xff] }
 0x23b   : > { %v919_v63 = vpop.f32.mrf.mxu0  ;;  %v1229_v31 = vor.u32 1.1754944e-38, %v1228_v21  ;;  %vm1227_vm10 = vcmp.eq.f32.partialorder %v1226_v20, 8.507059e+37 }
 0x23c   : > { %v1205_v0 = vmul.f32 %v2308_v58, %v1204_v61  ;;  %v2894_v2 = vadd.f32 %v1077_v12, %v919_v63  ;;  %v1519_v63 = vpop.xlane.xlu1 %1518 }
 0x23e   : > { %v2310_v3 = vpop.eup %2309  ;;  %v1206_v4 = vadd.f32 %v2308_v58, %v1205_v0  ;;  %v2145_v5 = vmul.f32 -1.442695, %v2894_v2 }
 0x23f   : > { %v2312_v6 = vpop.eup %2311  ;;  %v2897_v8 = vadd.f32 1.0, %v2310_v3 }
 0x240   : > { %v1210_v11 = vsel %vm1209_vm5, %v2308_v58, %v1206_v4  ;;  %v1218_v13 = vmul.f32 %v2312_v6, %v1187_v59  ;;  %2313 = vpow2.f32 %v2145_v5  ;;  %vm1223_vm7 = vweird.f32 %v2312_v6  ;;  %v1576_v59 = vld [vmem:[#allocation3 + $0x48] sm:$0xff] }
 0x241   : > { %v1215_v14 = vsel %vm1212_vm6, %v1214_v7, %v1210_v11  ;;  %2315 = vrcp.f32 %v2897_v8  ;;  %vm1224_vm9 = vmor %vm1222_vm8, %vm1223_vm7  ;;  %v1241_v44 = vand.u32 2147483647, %v2897_v8  ;;  %v1243_v46 = vand.u32 2147483648, %v2897_v8 }
 0x242   : > { %v1442_v17 = vmul.f32 %v1215_v14, %v1090_v36  ;;  %v1219_v18 = vsub.f32 1.0, %v1218_v13  ;;  %vm1237_vm12 = vweird.f32 %v2897_v8  ;;  %v1124_v4 = vadd.f32 %v1108_v60, %v1032_v39 }
 0x243   : > { %v922_v22 = vpop.f32.mrf.mxu0  ;;  %v1244_v57 = vor.u32 1.1754944e-38, %v1243_v46  ;;  %vm1242_vm14 = vcmp.eq.f32.partialorder %v1241_v44, 8.507059e+37 }
 0x244   : > { %v1220_v23 = vmul.f32 %v2312_v6, %v1219_v18  ;;  %v2900_v24 = vadd.f32 %v1078_v15, %v922_v22  ;;  %v1458_v25 = vmul.f32 %v1442_v17, %v1122_v19  ;;  %v1080_v18 = vld [vmem:[#allocation2 + $0x60] sm:$0xff]  ;;  %v1109_v19 = vld [vmem:[#allocation2 + $0x48] sm:$0xff] }
 0x246   : > { %v2314_v26 = vpop.eup %2313  ;;  %v1221_v27 = vadd.f32 %v2312_v6, %v1220_v23  ;;  %v2146_v28 = vmul.f32 -1.442695, %v2900_v24  ;;  %v1559_v29 = vmul.f32 %v1513_v16, %v1458_v25 }
 0x247   : > { %v2316_v30 = vpop.eup %2315  ;;  %v2903_v32 = vadd.f32 1.0, %v2314_v26 }
 0x248   : > { %v1225_v35 = vsel %vm1224_vm9, %v2312_v6, %v1221_v27  ;;  %v1233_v36 = vmul.f32 %v2316_v30, %v2897_v8  ;;  %2317 = vpow2.f32 %v2146_v28  ;;  %1656 = vmatmul.f32.vlgmr.msrb.gmra.mxu2 %v1559_v29  ;;  %v1591_v42 = vadd.f32 %v1575_v33, %v1559_v29  ;;  %v1035_v6 = vpop.f32.mrf.mxu1 }
 0x249   : > { %v1230_v37 = vsel %vm1227_vm10, %v1229_v31, %v1225_v35  ;;  %2319 = vrcp.f32 %v2903_v32  ;;  %vm1238_vm11 = vweird.f32 %v2316_v30  ;;  %v1258_v5 = vand.u32 2147483648, %v2903_v32  ;;  %v1522_v31 = vpop.xlane.xlu1 %1521  ;;  %v1578_v35 = vld [vmem:[#allocation3 + $0x78] sm:$0xff] }
 0x24a   : > { %v1443_v40 = vmul.f32 %v1230_v37, %v2884_v45  ;;  %v1234_v41 = vsub.f32 1.0, %v1233_v36  ;;  %1607 = vst [vmem:[#allocation3] sm:$0xff] %v1591_v42  ;;  %vm1239_vm13 = vmor %vm1237_vm12, %vm1238_vm11  ;;  %v1256_v8 = vand.u32 2147483647, %v2903_v32  ;;  %vm1252_vm1 = vweird.f32 %v2903_v32  ;;  %v1110_v42 = vld [vmem:[#allocation2 + $0x88] sm:$0xff] }
 0x24b   : > { %v925_v47 = vpop.f32.mrf.mxu0  ;;  %v1125_v28 = vadd.f32 %v1109_v19, %v1035_v6 }
 0x24c   : > { %v1235_v49 = vmul.f32 %v2316_v30, %v1234_v41  ;;  %v2910_v50 = vadd.f32 %v1079_v38, %v925_v47  ;;  %v1459_v51 = vmul.f32 %v1443_v40, %v1123_v43  ;;  %vm1257_vm3 = vcmp.eq.f32.partialorder %v1256_v8, 8.507059e+37  ;;  %v1081_v38 = vld [vmem:[#allocation2 + $0x8] sm:$0xff] }
 0x24e   : > { %v2318_v52 = vpop.eup %2317  ;;  %v1236_v53 = vadd.f32 %v2316_v30, %v1235_v49  ;;  %v2147_v45 = vmul.f32 -1.442695, %v2910_v50  ;;  %v1560_v55 = vmul.f32 %v1516_v48, %v1459_v51 }
 0x24f   : > { %v2320_v56 = vpop.eup %2319  ;;  %v2914_v58 = vadd.f32 1.0, %v2318_v52 }
 0x250   : > { %v1240_v12 = vsel %vm1239_vm13, %v2316_v30, %v1236_v53  ;;  %v1248_v61 = vmul.f32 %v2320_v56, %v2903_v32  ;;  %2321 = vpow2.f32 %v2147_v45  ;;  %1659 = vmatmul.f32.gmra.mxu2 %v1560_v55  ;;  %v1592_v3 = vadd.f32 %v1576_v59, %v1560_v55  ;;  %v1038_v36 = vpop.f32.mrf.mxu1  ;;  %v1525_v45 = vpop.xlane.xlu2 %1524 }
 0x251   : > { %v1245_v62 = vsel %vm1242_vm14, %v1244_v57, %v1240_v12  ;;  %2323 = vrcp.f32 %v2914_v58  ;;  %vm1253_vm15 = vweird.f32 %v2320_v56  ;;  %v1271_v29 = vand.u32 2147483647, %v2914_v58 }
 0x252   : > { %v1444_v0 = vmul.f32 %v1245_v62, %v2891_v54  ;;  %v1249_v1 = vsub.f32 1.0, %v1248_v61  ;;  %1608 = vst [vmem:[#allocation3 + $0x48] sm:$0xff] %v1592_v3  ;;  %vm1254_vm2 = vmor %vm1252_vm1, %vm1253_vm15  ;;  %v1259_v54 = vor.u32 1.1754944e-38, %v1258_v5  ;;  %v1273_v30 = vand.u32 2147483648, %v2914_v58  ;;  %v1579_v61 = vld [vmem:[#allocation3 + $0x8] sm:$0xff]  ;;  %v1082_v62 = vld [vmem:[#allocation2 + $0x38] sm:$0xff] }
 0x253   : > { %vm1267_vm5 = vweird.f32 %v2914_v58  ;;  %vm1272_vm7 = vcmp.eq.f32.partialorder %v1271_v29, 8.507059e+37  ;;  %v1126_v53 = vadd.f32 %v1110_v42, %v1038_v36 }
 0x254   : > { %v1250_v7 = vmul.f32 %v2320_v56, %v1249_v1  ;;  %v1460_v9 = vmul.f32 %v1444_v0, %v1124_v4  ;;  %v1274_v40 = vor.u32 1.1754944e-38, %v1273_v30  ;;  %v1111_v4 = vld [vmem:[#allocation2 + $0xb8] sm:$0xff] }
 0x256   : > { %v2322_v11 = vpop.eup %2321  ;;  %v1251_v13 = vadd.f32 %v2320_v56, %v1250_v7  ;;  %v1561_v14 = vmul.f32 %v1519_v63, %v1460_v9 }
 0x257   : > { %v2324_v15 = vpop.eup %2323  ;;  %v2922_v16 = vadd.f32 1.0, %v2322_v11  ;;  %v928_v17 = vpop.f32.mrf.mxu2 }
 0x258   : > { %v1255_v20 = vsel %vm1254_vm2, %v2320_v56, %v1251_v13  ;;  %v1263_v21 = vmul.f32 %v2324_v15, %v2914_v58  ;;  %v1593_v22 = vadd.f32 %v1577_v10, %v1561_v14  ;;  %1662 = vmatmul.f32.gmra.mxu2 %v1561_v14  ;;  %v2927_v27 = vadd.f32 %v1080_v18, %v928_v17  ;;  %v2933_v43 = vpop.f32.mrf.mxu3  ;;  %v1041_v3 = vpop.f32.mrf.mxu1  ;;  %v1083_v18 = vld [vmem:[#allocation2 + $0x40] sm:$0xff] }
 0x259   : > { %v1260_v23 = vsel %vm1257_vm3, %v1259_v54, %v1255_v20  ;;  %2325 = vrcp.f32 %v2922_v16  ;;  %vm1268_vm4 = vweird.f32 %v2324_v15  ;;  %v1288_v55 = vand.u32 2147483648, %v2922_v16  ;;  %v1528_v54 = vpop.xlane.xlu2 %1527  ;;  %v1580_v20 = vld [vmem:[#allocation3 + $0x50] sm:$0xff] }
 0x25a   : > { %v1445_v25 = vmul.f32 %v1260_v23, %v2894_v2  ;;  %v1264_v26 = vsub.f32 1.0, %v1263_v21  ;;  %1609 = vst [vmem:[#allocation3 + $0x68] sm:$0xff] %v1593_v22  ;;  %v2148_v33 = vmul.f32 -1.442695, %v2927_v27  ;;  %vm1269_vm6 = vmor %vm1267_vm5, %vm1268_vm4  ;;  %v1286_v59 = vand.u32 2147483647, %v2922_v16 }
 0x25b   : > { %vm1282_vm9 = vweird.f32 %v2922_v16  ;;  %v1289_v0 = vor.u32 1.1754944e-38, %v1288_v55  ;;  %v1127_v13 = vadd.f32 %v1111_v4, %v1041_v3 }
 0x25c   : > { %v1265_v32 = vmul.f32 %v2324_v15, %v1264_v26  ;;  %v1461_v34 = vmul.f32 %v1445_v25, %v1125_v28  ;;  %2327 = vpow2.f32 %v2148_v33  ;;  %vm1287_vm11 = vcmp.eq.f32.partialorder %v1286_v59, 8.507059e+37  ;;  %v1112_v33 = vld [vmem:[#allocation2 + $0xf0] sm:$0xff]  ;;  %v1581_v59 = vld [vmem:[#allocation3 + $0x40] sm:$0xff] }
 0x25e   : > { %v1266_v37 = vadd.f32 %v2324_v15, %v1265_v32  ;;  %v1562_v2 = vmul.f32 %v1522_v31, %v1461_v34 }
 0x25f   : > { %v2326_v39 = vpop.eup %2325  ;;  %v931_v41 = vpop.f32.mrf.mxu2 }
 0x260   : > { %v1270_v44 = vsel %vm1269_vm6, %v2324_v15, %v1266_v37  ;;  %v1278_v46 = vmul.f32 %v2326_v39, %v2922_v16  ;;  %v1594_v47 = vadd.f32 %v1578_v35, %v1562_v2  ;;  %1665 = vmatmul.f32.gmra.mxu2 %v1562_v2  ;;  %v2936_v49 = vadd.f32 %v1081_v38, %v931_v41  ;;  %v2945_v9 = vpop.f32.mrf.mxu3  ;;  %v1084_v38 = vld [vmem:[#allocation2 + $0xe0] sm:$0xff] }
 0x261   : > { %v1275_v48 = vsel %vm1272_vm7, %v1274_v40, %v1270_v44  ;;  %vm1283_vm8 = vweird.f32 %v2326_v39  ;;  %v1128_v40 = vadd.f32 %v1112_v33, %v2933_v43  ;;  %v1113_v43 = vld [vmem:[#allocation2 + $0x78] sm:$0xff]  ;;  %v1537_v33 = vpop.xlane.xlu2 %1536 }
 0x262   : > { %v1446_v51 = vmul.f32 %v1275_v48, %v2900_v24  ;;  %v1279_v52 = vsub.f32 1.0, %v1278_v46  ;;  %1610 = vst [vmem:[#allocation3 + $0x78] sm:$0xff] %v1594_v47  ;;  %v2149_v56 = vmul.f32 -1.442695, %v2936_v49  ;;  %v2328_v57 = vpop.eup %2327  ;;  %vm1284_vm10 = vmor %vm1282_vm9, %vm1283_vm8 }
 0x263   : > { %v1192_v12 = vadd.f32 1.0, %v2328_v57 }
 0x264   : > { %v1280_v58 = vmul.f32 %v2326_v39, %v1279_v52  ;;  %v1462_v60 = vmul.f32 %v1446_v51, %v1126_v53  ;;  %2329 = vpow2.f32 %v2149_v56  ;;  %v1531_v53 = vpop.xlane.xlu0 %1530 }
 0x265   : > { %2331 = vrcp.f32 %v1192_v12  ;;  %v1303_v25 = vand.u32 2147483648, %v1192_v12  ;;  %v1301_v30 = vand.u32 2147483647, %v1192_v12  ;;  %vm1297_vm13 = vweird.f32 %v1192_v12 }
 0x266   : > { %v1281_v63 = vadd.f32 %v2326_v39, %v1280_v58  ;;  %v1563_v24 = vmul.f32 %v1525_v45, %v1462_v60 }
 0x267   : > { %v934_v1 = vpop.f32.mrf.mxu2  ;;  %v1304_v37 = vor.u32 1.1754944e-38, %v1303_v25  ;;  %vm1302_vm15 = vcmp.eq.f32.partialorder %v1301_v30, 8.507059e+37 }
 0x268   : > { %v1285_v5 = vsel %vm1284_vm10, %v2326_v39, %v1281_v63  ;;  %v1595_v6 = vadd.f32 %v1579_v61, %v1563_v24  ;;  %v2943_v7 = vadd.f32 %v1082_v62, %v934_v1  ;;  %1668 = vmatmul.f32.gmra.mxu2 %v1563_v24  ;;  %v2957_v34 = vpop.f32.mrf.mxu3  ;;  %v1129_v63 = vadd.f32 %v1113_v43, %v2945_v9  ;;  %v1085_v24 = vld [vmem:[#allocation2 + $0x70] sm:$0xff]  ;;  %v1534_v9 = vpop.xlane.xlu1 %1533 }
 0x269   : > { %v1290_v8 = vsel %vm1287_vm11, %v1289_v0, %v1285_v5  ;;  %v1723_v5 = vld [vmem:[%s2975_s29 + $0x8] sm:$0xff]  ;;  %v1087_v43 = vld [vmem:[#allocation2 + $0x10] sm:$0xff] }
 0x26a   : > { %v1447_v10 = vmul.f32 %v1290_v8, %v2910_v50  ;;  %1611 = vst [vmem:[#allocation3 + $0x8] sm:$0xff] %v1595_v6  ;;  %v2150_v11 = vmul.f32 -1.442695, %v2943_v7  ;;  %v2330_v14 = vpop.eup %2329  ;;  %1786 = vmatpush.msrb.mxu3 %v1723_v5 }
 0x26b   : > { %v2949_v15 = vadd.f32 1.0, %v2330_v14  ;;  %v2332_v17 = vpop.eup %2331 }
 0x26c   : > { %2333 = vpow2.f32 %v2150_v11  ;;  %v1463_v16 = vmul.f32 %v1447_v10, %v1127_v13  ;;  %v1293_v19 = vmul.f32 %v2332_v17, %v1192_v12  ;;  %vm1298_vm12 = vweird.f32 %v2332_v17 }
 0x26d   : > { %2335 = vrcp.f32 %v2949_v15  ;;  %vm1299_vm14 = vmor %vm1297_vm13, %vm1298_vm12  ;;  %v1318_v47 = vand.u32 2147483648, %v2949_v15  ;;  %v1316_v52 = vand.u32 2147483647, %v2949_v15  ;;  %vm1312_vm2 = vweird.f32 %v2949_v15 }
 0x26e   : > { %v1564_v21 = vmul.f32 %v1528_v54, %v1463_v16  ;;  %v1294_v23 = vsub.f32 1.0, %v1293_v19 }
 0x26f   : > { %v937_v22 = vpop.f32.mrf.mxu2  ;;  %v1319_v60 = vor.u32 1.1754944e-38, %v1318_v47  ;;  %vm1317_vm4 = vcmp.eq.f32.partialorder %v1316_v52, 8.507059e+37  ;;  %v1583_v52 = vld [vmem:[#allocation3 + $0x70] sm:$0xff] }
 0x270   : > { %v2952_v50 = vadd.f32 %v1083_v18, %v937_v22  ;;  %v1596_v26 = vadd.f32 %v1580_v20, %v1564_v21  ;;  %1671 = vmatmul.f32.gmra.mxu2 %v1564_v21  ;;  %v1295_v29 = vmul.f32 %v2332_v17, %v1294_v23  ;;  %v1053_v0 = vpop.f32.mrf.mxu3  ;;  %v1582_v21 = vld [vmem:[#allocation3 + $0x38] sm:$0xff] }
 0x272   : > { %v2334_v28 = vpop.eup %2333  ;;  %v2151_v31 = vmul.f32 -1.442695, %v2952_v50  ;;  %1612 = vst [vmem:[#allocation3 + $0x50] sm:$0xff] %v1596_v26  ;;  %v1296_v36 = vadd.f32 %v2332_v17, %v1295_v29  ;;  %v1086_v29 = vld [vmem:[#allocation2 + $0xa8] sm:$0xff] }
 0x273   : > { %v2955_v32 = vadd.f32 1.0, %v2334_v28  ;;  %v2336_v35 = vpop.eup %2335 }
 0x274   : > { %2337 = vpow2.f32 %v2151_v31  ;;  %v1308_v2 = vmul.f32 %v2336_v35, %v2949_v15  ;;  %v1300_v39 = vsel %vm1299_vm14, %v2332_v17, %v1296_v36  ;;  %vm1313_vm1 = vweird.f32 %v2336_v35  ;;  %v1114_v15 = vld [vmem:[#allocation2 + $0x58] sm:$0xff] }
 0x275   : > { %2339 = vrcp.f32 %v2955_v32  ;;  %v1305_v41 = vsel %vm1302_vm15, %v1304_v37, %v1300_v39  ;;  %vm1314_vm3 = vmor %vm1312_vm2, %vm1313_vm1  ;;  %v1333_v8 = vand.u32 2147483648, %v2955_v32  ;;  %v1331_v13 = vand.u32 2147483647, %v2955_v32 }
 0x276   : > { %v1309_v42 = vsub.f32 1.0, %v1308_v2  ;;  %v1448_v46 = vmul.f32 %v1305_v41, %v2927_v27  ;;  %vm1327_vm6 = vweird.f32 %v2955_v32  ;;  %v1130_v23 = vadd.f32 %v1114_v15, %v2957_v34 }
 0x277   : > { %v940_v44 = vpop.f32.mrf.mxu2  ;;  %v1334_v19 = vor.u32 1.1754944e-38, %v1333_v8  ;;  %vm1332_vm8 = vcmp.eq.f32.partialorder %v1331_v13, 8.507059e+37 }
 0x278   : > { %v2964_v48 = vadd.f32 %v1084_v38, %v940_v44  ;;  %v1310_v51 = vmul.f32 %v2336_v35, %v1309_v42  ;;  %v1464_v56 = vmul.f32 %v1448_v46, %v1128_v40  ;;  %v1056_v37 = vpop.f32.mrf.mxu3  ;;  %v1115_v40 = vld [vmem:[#allocation2 + $0xc8] sm:$0xff] }
 0x27a   : > { %v2338_v45 = vpop.eup %2337  ;;  %v2152_v55 = vmul.f32 -1.442695, %v2964_v48  ;;  %v1311_v58 = vadd.f32 %v2336_v35, %v1310_v51  ;;  %v1565_v61 = vmul.f32 %v1531_v53, %v1464_v56  ;;  %v1131_v53 = vadd.f32 %v1115_v40, %v1053_v0  ;;  %v1116_v0 = vld [vmem:[#allocation2 + $0x90] sm:$0xff] }
 0x27b   : > { %v2340_v57 = vpop.eup %2339  ;;  %v2969_v27 = vadd.f32 1.0, %v2338_v45  ;;  %v1132_v13 = vadd.f32 %v1116_v0, %v1056_v37 }
 0x27c   : > { %v1323_v12 = vmul.f32 %v2340_v57, %v2955_v32  ;;  %2341 = vpow2.f32 %v2152_v55  ;;  %v1315_v62 = vsel %vm1314_vm3, %v2336_v35, %v1311_v58  ;;  %v1597_v4 = vadd.f32 %v1581_v59, %v1565_v61  ;;  %1674 = vmatmul.f32.gmra.mxu2 %v1565_v61  ;;  %v1540_v61 = vpop.xlane.xlu0 %1539 }
 0x27d   : > { %2343 = vrcp.f32 %v2969_v27  ;;  %v1320_v1 = vsel %vm1317_vm4, %v1319_v60, %v1315_v62  ;;  %vm1328_vm5 = vweird.f32 %v2340_v57  ;;  %v1346_v35 = vand.u32 2147483647, %v2969_v27 }
 0x27e   : > { %v1324_v3 = vsub.f32 1.0, %v1323_v12  ;;  %v1449_v6 = vmul.f32 %v1320_v1, %v2936_v49  ;;  %1613 = vst [vmem:[#allocation3 + $0x40] sm:$0xff] %v1597_v4  ;;  %vm1329_vm7 = vmor %vm1327_vm6, %vm1328_vm5  ;;  %v1348_v36 = vand.u32 2147483648, %v2969_v27  ;;  %vm1342_vm10 = vweird.f32 %v2969_v27 }
 0x27f   : > { %v943_v10 = vpop.f32.mrf.mxu2  ;;  %vm1347_vm12 = vcmp.eq.f32.partialorder %v1346_v35, 8.507059e+37 }
 0x280   : > { %v1325_v11 = vmul.f32 %v2340_v57, %v1324_v3  ;;  %v2984_v14 = vadd.f32 %v1085_v24, %v943_v10  ;;  %v1465_v54 = vmul.f32 %v1449_v6, %v1129_v63  ;;  %v1349_v47 = vor.u32 1.1754944e-38, %v1348_v36  ;;  %v1059_v1 = vpop.f32.mrf.mxu3  ;;  %v1585_v36 = vld [vmem:[#allocation3 + $0x18] sm:$0xff] }
 0x282   : > { %v2342_v16 = vpop.eup %2341  ;;  %v1326_v17 = vadd.f32 %v2340_v57, %v1325_v11  ;;  %v2153_v49 = vmul.f32 -1.442695, %v2984_v14  ;;  %v1566_v22 = vmul.f32 %v1534_v9, %v1465_v54  ;;  %v1584_v11 = vld [vmem:[#allocation3 + $0x60] sm:$0xff] }
 0x283   : > { %v2344_v18 = vpop.eup %2343  ;;  %v2988_v20 = vadd.f32 1.0, %v2342_v16  ;;  %v1088_v16 = vld [vmem:[#allocation2 + $0xa0] sm:$0xff] }
 0x284   : > { %v1330_v25 = vsel %vm1329_vm7, %v2340_v57, %v1326_v17  ;;  %v1338_v26 = vmul.f32 %v2344_v18, %v2969_v27  ;;  %2345 = vpow2.f32 %v2153_v49  ;;  %v1598_v32 = vadd.f32 %v1582_v21, %v1566_v22  ;;  %1677 = vmatmul.f32.gmra.mxu2 %v1566_v22  ;;  %v1543_v22 = vpop.xlane.xlu1 %1542 }
 0x285   : > { %v1335_v28 = vsel %vm1332_vm8, %v1334_v19, %v1330_v25  ;;  %2347 = vrcp.f32 %v2988_v20  ;;  %vm1343_vm9 = vweird.f32 %v2344_v18  ;;  %v1361_v59 = vand.u32 2147483647, %v2988_v20 }
 0x286   : > { %v1450_v30 = vmul.f32 %v1335_v28, %v2943_v7  ;;  %v1339_v31 = vsub.f32 1.0, %v1338_v26  ;;  %1614 = vst [vmem:[#allocation3 + $0x38] sm:$0xff] %v1598_v32  ;;  %vm1344_vm11 = vmor %vm1342_vm10, %vm1343_vm9  ;;  %v1363_v60 = vand.u32 2147483648, %v2988_v20  ;;  %vm1357_vm14 = vweird.f32 %v2988_v20  ;;  %v1117_v28 = vld [vmem:[#allocation2 + $0xc0] sm:$0xff] }
 0x287   : > { %v946_v34 = vpop.f32.mrf.mxu2  ;;  %vm1362_vm1 = vcmp.eq.f32.partialorder %v1361_v59, 8.507059e+37 }
 0x288   : > { %v1340_v2 = vmul.f32 %v2344_v18, %v1339_v31  ;;  %v2996_v38 = vadd.f32 %v1086_v29, %v946_v34  ;;  %v1466_v39 = vmul.f32 %v1450_v30, %v1130_v23  ;;  %v1364_v8 = vor.u32 1.1754944e-38, %v1363_v60  ;;  %v1062_v37 = vpop.f32.mrf.mxu3 }
 0x289   : > { %v1133_v34 = vadd.f32 %v1117_v28, %v1059_v1 }
 0x28a   : > { %v2346_v41 = vpop.eup %2345  ;;  %v1341_v42 = vadd.f32 %v2344_v18, %v1340_v2  ;;  %v2154_v7 = vmul.f32 -1.442695, %v2996_v38  ;;  %v1567_v44 = vmul.f32 %v1537_v33, %v1466_v39 }
 0x28b   : > { %v2348_v46 = vpop.eup %2347  ;;  %v3000_v51 = vadd.f32 1.0, %v2346_v41  ;;  %v1089_v41 = vld [vmem:[#allocation2 + $0x20] sm:$0xff] }
 0x28c   : > { %v1345_v45 = vsel %vm1344_vm11, %v2344_v18, %v1341_v42  ;;  %v1353_v55 = vmul.f32 %v2348_v46, %v2988_v20  ;;  %2349 = vpow2.f32 %v2154_v7  ;;  %v1599_v27 = vadd.f32 %v1583_v52, %v1567_v44  ;;  %1680 = vmatmul.f32.gmra.mxu2 %v1567_v44 }
 0x28d   : > { %v1350_v56 = vsel %vm1347_vm12, %v1349_v47, %v1345_v45  ;;  %2351 = vrcp.f32 %v3000_v51  ;;  %vm1358_vm13 = vweird.f32 %v2348_v46  ;;  %v1376_v19 = vand.u32 2147483647, %v3000_v51 }
 0x28e   : > { %v1451_v57 = vmul.f32 %v1350_v56, %v2952_v50  ;;  %v1354_v58 = vsub.f32 1.0, %v1353_v55  ;;  %1615 = vst [vmem:[#allocation3 + $0x70] sm:$0xff] %v1599_v27  ;;  %vm1359_vm15 = vmor %vm1357_vm14, %vm1358_vm13  ;;  %v1378_v20 = vand.u32 2147483648, %v3000_v51  ;;  %vm1372_vm3 = vweird.f32 %v3000_v51 }
 0x28f   : > { %v949_v12 = vpop.f32.mrf.mxu2  ;;  %vm1377_vm5 = vcmp.eq.f32.partialorder %v1376_v19, 8.507059e+37 }
 0x290   : > { %v1355_v62 = vmul.f32 %v2348_v46, %v1354_v58  ;;  %v3007_v63 = vadd.f32 %v1087_v43, %v949_v12  ;;  %v1467_v24 = vmul.f32 %v1451_v57, %v1131_v53  ;;  %v1379_v33 = vor.u32 1.1754944e-38, %v1378_v20  ;;  %v1546_v53 = vpop.xlane.xlu2 %1545  ;;  %v1118_v43 = vld [vmem:[#allocation2 + $0xd0] sm:$0xff] }
 0x292   : > { %v2350_v3 = vpop.eup %2349  ;;  %v1356_v4 = vadd.f32 %v2348_v46, %v1355_v62  ;;  %v2155_v50 = vmul.f32 -1.442695, %v3007_v63  ;;  %v1568_v5 = vmul.f32 %v1540_v61, %v1467_v24  ;;  %v1586_v61 = vld [vmem:[#allocation3 + $0x20] sm:$0xff]  ;;  %v1134_v62 = vadd.f32 %v1118_v43, %v1062_v37 }
 0x293   : > { %v2352_v6 = vpop.eup %2351  ;;  %v3011_v10 = vadd.f32 1.0, %v2350_v3  ;;  %v1065_v3 = vpop.f32.mrf.mxu3 }
 0x294   : > { %v1360_v9 = vsel %vm1359_vm15, %v2348_v46, %v1356_v4  ;;  %v1368_v15 = vmul.f32 %v2352_v6, %v3000_v51  ;;  %2353 = vpow2.f32 %v2155_v50  ;;  %v1600_v18 = vadd.f32 %v1584_v11, %v1568_v5  ;;  %1683 = vmatmul.f32.gmra.mxu2 %v1568_v5  ;;  %v1722_v46 = vld [vmem:[%s2975_s29] sm:$0xff] }
 0x295   : > { %v1365_v54 = vsel %vm1362_vm1, %v1364_v8, %v1360_v9  ;;  %2355 = vrcp.f32 %v3011_v10  ;;  %vm1373_vm2 = vweird.f32 %v2352_v6  ;;  %v1391_v47 = vand.u32 2147483647, %v3011_v10  ;;  %1787 = vmatpush.msrb.mxu3 %v1722_v46  ;;  %v1549_v8 = vpop.xlane.xlu0 %1548  ;;  %v1119_v9 = vld [vmem:[#allocation2 + $0x28] sm:$0xff] }
 0x296   : > { %v1452_v17 = vmul.f32 %v1365_v54, %v2964_v48  ;;  %v1369_v49 = vsub.f32 1.0, %v1368_v15  ;;  %1616 = vst [vmem:[#allocation3 + $0x60] sm:$0xff] %v1600_v18  ;;  %vm1374_vm4 = vmor %vm1372_vm3, %vm1373_vm2  ;;  %v1393_v51 = vand.u32 2147483648, %v3011_v10  ;;  %vm1387_vm7 = vweird.f32 %v3011_v10  ;;  %v1587_v15 = vld [vmem:[#allocation3 + $0x10] sm:$0xff] }
 0x297   : > { %v952_v21 = vpop.f32.mrf.mxu2  ;;  %vm1392_vm9 = vcmp.eq.f32.partialorder %v1391_v47, 8.507059e+37  ;;  %v1135_v19 = vadd.f32 %v1119_v9, %v1065_v3 }
 0x298   : > { %v1370_v23 = vmul.f32 %v2352_v6, %v1369_v49  ;;  %v3018_v25 = vadd.f32 %v1088_v16, %v952_v21  ;;  %v1468_v26 = vmul.f32 %v1452_v17, %v1132_v13  ;;  %v1394_v60 = vor.u32 1.1754944e-38, %v1393_v51  ;;  %v1555_v51 = vpop.xlane.xlu2 %1554 }
 0x29a   : > { %v2354_v29 = vpop.eup %2353  ;;  %v1371_v30 = vadd.f32 %v2352_v6, %v1370_v23  ;;  %v2156_v48 = vmul.f32 -1.442695, %v3018_v25  ;;  %v1569_v31 = vmul.f32 %v1543_v22, %v1468_v26 }
 0x29b   : > { %v2356_v32 = vpop.eup %2355  ;;  %v3022_v35 = vadd.f32 1.0, %v2354_v29 }
 0x29c   : > { %v1375_v2 = vsel %vm1374_vm4, %v2352_v6, %v1371_v30  ;;  %v1383_v39 = vmul.f32 %v2356_v32, %v3011_v10  ;;  %2357 = vpow2.f32 %v2156_v48  ;;  %v1601_v44 = vadd.f32 %v1585_v36, %v1569_v31  ;;  %1686 = vmatmul.f32.gmra.mxu2 %v1569_v31  ;;  %v1552_v30 = vpop.xlane.xlu1 %1551  ;;  %v1068_v48 = vpop.f32.mrf.mxu3  ;;  %v1588_v36 = vld [vmem:[#allocation3 + $0x30] sm:$0xff] }
 0x29d   : > { %v1380_v40 = vsel %vm1377_vm5, %v1379_v33, %v1375_v2  ;;  %2359 = vrcp.f32 %v3022_v35  ;;  %vm1388_vm6 = vweird.f32 %v2356_v32  ;;  %v1408_v6 = vand.u32 2147483648, %v3022_v35 }
 0x29e   : > { %v1453_v42 = vmul.f32 %v1380_v40, %v2984_v14  ;;  %v1384_v7 = vsub.f32 1.0, %v1383_v39  ;;  %1617 = vst [vmem:[#allocation3 + $0x18] sm:$0xff] %v1601_v44  ;;  %vm1389_vm8 = vmor %vm1387_vm7, %vm1388_vm6  ;;  %v1406_v11 = vand.u32 2147483647, %v3022_v35  ;;  %vm1402_vm11 = vweird.f32 %v3022_v35 }
 0x29f   : > { %v955_v52 = vpop.f32.mrf.mxu2  ;;  %v1409_v49 = vor.u32 1.1754944e-38, %v1408_v6 }
 0x2a0   : > { %v1385_v45 = vmul.f32 %v2356_v32, %v1384_v7  ;;  %v3030_v55 = vadd.f32 %v1089_v41, %v955_v52  ;;  %v1469_v56 = vmul.f32 %v1453_v42, %v1133_v34  ;;  %vm1407_vm13 = vcmp.eq.f32.partialorder %v1406_v11, 8.507059e+37 }
 0x2a2   : > { %v2358_v57 = vpop.eup %2357  ;;  %v1386_v14 = vadd.f32 %v2356_v32, %v1385_v45  ;;  %v2157_v58 = vmul.f32 -1.442695, %v3030_v55  ;;  %v1570_v27 = vmul.f32 %v1546_v53, %v1469_v56  ;;  %v1589_v56 = vld [vmem:[#allocation3 + $0x28] sm:$0xff] }
 0x2a3   : > { %v2360_v59 = vpop.eup %2359  ;;  %v1200_v12 = vadd.f32 1.0, %v2358_v57  ;;  %v1121_v57 = vld [vmem:[#allocation2 + $0x98] sm:$0xff] }
 0x2a4   : > { %v1390_v24 = vsel %vm1389_vm8, %v2356_v32, %v1386_v14  ;;  %v1398_v0 = vmul.f32 %v2360_v59, %v3022_v35  ;;  %2361 = vpow2.f32 %v2157_v58  ;;  %v1602_v5 = vadd.f32 %v1586_v61, %v1570_v27  ;;  %1689 = vmatmul.f32.gmra.mxu2 %v1570_v27  ;;  %v1120_v35 = vld [vmem:[#allocation2 + $0xf8] sm:$0xff]  ;;  %v1071_v43 = vpop.f32.mrf.mxu3 }
 0x2a5   : > { %v1395_v1 = vsel %vm1392_vm9, %v1394_v60, %v1390_v24  ;;  %2363 = vrcp.f32 %v1200_v12  ;;  %vm1403_vm10 = vweird.f32 %v2360_v59  ;;  %v1423_v29 = vand.u32 2147483648, %v1200_v12 }
 0x2a6   : > { %v1454_v4 = vmul.f32 %v1395_v1, %v2996_v38  ;;  %v1399_v50 = vsub.f32 1.0, %v1398_v0  ;;  %1618 = vst [vmem:[#allocation3 + $0x20] sm:$0xff] %v1602_v5  ;;  %vm1404_vm12 = vmor %vm1402_vm11, %vm1403_vm10  ;;  %v1421_v32 = vand.u32 2147483647, %v1200_v12  ;;  %vm1417_vm15 = vweird.f32 %v1200_v12  ;;  %v1590_v0 = vld [vmem:[#allocation3 + $0x58] sm:$0xff] }
 0x2a7   : > { %v1424_v39 = vor.u32 1.1754944e-38, %v1423_v29  ;;  %v1136_v40 = vadd.f32 %v1120_v35, %v1068_v48  ;;  %v1137_v60 = vadd.f32 %v1121_v57, %v1071_v43  ;;  %v1716_v43 = vld [vmem:[#allocation4 + $0x78] sm:$0xff] }
 0x2a8   : > { %v1400_v10 = vmul.f32 %v2360_v59, %v1399_v50  ;;  %v1470_v13 = vmul.f32 %v1454_v4, %v1134_v62  ;;  %vm1422_vm2 = vcmp.eq.f32.partialorder %v1421_v32, 8.507059e+37  ;;  %v1558_v62 = vpop.xlane.xlu0 %1557  ;;  %v1709_v32 = vld [vmem:[#allocation4 + $0x8] sm:$0xff] }
 0x2aa   : > { %v2362_v54 = vpop.eup %2361  ;;  %v1401_v16 = vadd.f32 %v2360_v59, %v1400_v10  ;;  %v1571_v17 = vmul.f32 %v1549_v8, %v1470_v13 }
 0x2ab   : > { %v2364_v38 = vpop.eup %2363  ;;  %v1201_v18 = vadd.f32 1.0, %v2362_v54 }
 0x2ac   : > { %v1405_v20 = vsel %vm1404_vm12, %v2360_v59, %v1401_v16  ;;  %v1413_v21 = vmul.f32 %v2364_v38, %v1200_v12  ;;  %v1603_v22 = vadd.f32 %v1587_v15, %v1571_v17  ;;  %1692 = vmatmul.f32.gmra.mxu2 %v1571_v17  ;;  %vm1418_vm14 = vweird.f32 %v2364_v38 }
 0x2ad   : > { %v1410_v23 = vsel %vm1407_vm13, %v1409_v49, %v1405_v20  ;;  %2365 = vrcp.f32 %v1201_v18  ;;  %vm1419_vm1 = vmor %vm1417_vm15, %vm1418_vm14  ;;  %v1438_v47 = vand.u32 2147483648, %v1201_v18  ;;  %v1436_v53 = vand.u32 2147483647, %v1201_v18 }
 0x2ae   : > { %v1455_v26 = vmul.f32 %v1410_v23, %v3007_v63  ;;  %v1414_v28 = vsub.f32 1.0, %v1413_v21  ;;  %1619 = vst [vmem:[#allocation3 + $0x10] sm:$0xff] %v1603_v22  ;;  %vm1432_vm4 = vweird.f32 %v1201_v18  ;;  %v1706_v21 = vld [vmem:[#allocation4 + $0x10] sm:$0xff] }
 0x2af   : > { %v1439_v27 = vor.u32 1.1754944e-38, %v1438_v47  ;;  %vm1437_vm6 = vcmp.eq.f32.partialorder %v1436_v53, 8.507059e+37  ;;  %v1714_v47 = vld [vmem:[#allocation4] sm:$0xff]  ;;  %v1715_v53 = vld [vmem:[#allocation4 + $0x38] sm:$0xff] }
 0x2b0   : > { %v1415_v31 = vmul.f32 %v2364_v38, %v1414_v28  ;;  %v1471_v33 = vmul.f32 %v1455_v26, %v1135_v19  ;;  %v1707_v26 = vld [vmem:[#allocation4 + $0x48] sm:$0xff] }
 0x2b2   : > { %v1416_v34 = vadd.f32 %v2364_v38, %v1415_v31  ;;  %v1572_v37 = vmul.f32 %v1552_v30, %v1471_v33  ;;  %v1708_v30 = vld [vmem:[#allocation4 + $0x70] sm:$0xff] }
 0x2b3   : > { %v2366_v2 = vpop.eup %2365 }
 0x2b4   : > { %v1420_v63 = vsel %vm1419_vm1, %v2364_v38, %v1416_v34  ;;  %v1428_v41 = vmul.f32 %v2366_v2, %v1201_v18  ;;  %v1604_v42 = vadd.f32 %v1588_v36, %v1572_v37  ;;  %1695 = vmatmul.f32.gmra.mxu2 %v1572_v37  ;;  %vm1433_vm3 = vweird.f32 %v2366_v2  ;;  %v1705_v18 = vld [vmem:[#allocation4 + $0x18] sm:$0xff]  ;;  %v1710_v36 = vld [vmem:[#allocation4 + $0x40] sm:$0xff] }
 0x2b5   : > { %v1425_v7 = vsel %vm1422_vm2, %v1424_v39, %v1420_v63  ;;  %vm1434_vm5 = vmor %vm1432_vm4, %vm1433_vm3  ;;  %v1712_v63 = vld [vmem:[#allocation4 + $0x58] sm:$0xff] }
 0x2b6   : > { %v1456_v44 = vmul.f32 %v1425_v7, %v3018_v25  ;;  %v1429_v46 = vsub.f32 1.0, %v1428_v41  ;;  %1620 = vst [vmem:[#allocation3 + $0x30] sm:$0xff] %v1604_v42  ;;  %v1713_v7 = vld [vmem:[#allocation4 + $0x28] sm:$0xff] }
 0x2b8   : > { %v1430_v52 = vmul.f32 %v2366_v2, %v1429_v46  ;;  %v1472_v45 = vmul.f32 %v1456_v44, %v1136_v40 }
 0x2ba   : > { %v1431_v14 = vadd.f32 %v2366_v2, %v1430_v52  ;;  %v1573_v58 = vmul.f32 %v1555_v51, %v1472_v45 }
 0x2bc   : > { %v1435_v59 = vsel %vm1434_vm5, %v2366_v2, %v1431_v14  ;;  %v1605_v25 = vadd.f32 %v1589_v56, %v1573_v58  ;;  %1698 = vmatmul.f32.gmra.mxu2 %v1573_v58  ;;  %v1711_v2 = vld [vmem:[#allocation4 + $0x68] sm:$0xff]  ;;  %v1717_v58 = vld [vmem:[#allocation4 + $0x30] sm:$0xff] }
 0x2bd   : > { %v1440_v12 = vsel %vm1437_vm6, %v1439_v27, %v1435_v59 }
 0x2be   : > { %v1457_v61 = vmul.f32 %v1440_v12, %v3030_v55  ;;  %1621 = vst [vmem:[#allocation3 + $0x28] sm:$0xff] %v1605_v25  ;;  %v1718_v25 = vld [vmem:[#allocation4 + $0x50] sm:$0xff] }
 0x2c0   : > { %v1473_v24 = vmul.f32 %v1457_v61, %v1137_v60  ;;  %v1719_v61 = vld [vmem:[#allocation4 + $0x20] sm:$0xff] }
 0x2c2   : > { %v1574_v1 = vmul.f32 %v1558_v62, %v1473_v24 }
 0x2c4   : > { %v1606_v3 = vadd.f32 %v1590_v0, %v1574_v1  ;;  %1701 = vmatmul.f32.gmra.mxu2 %v1574_v1  ;;  %v1720_v0 = vld [vmem:[#allocation4 + $0x60] sm:$0xff] }
 0x2c6   : > { %1622 = vst [vmem:[#allocation3 + $0x58] sm:$0xff] %v1606_v3 }
 0x2cb   : > { %v1657_v4 = vpop.f32.mrf.mxu2 }
 0x2cc   : > { %2158 = vmatmul.msk.f32.vlgmr.msrb.gmra.mxu3 %vm844_vm0, %v1657_v4 }
 0x2d3   : > { %v1660_v50 = vpop.f32.mrf.mxu2 }
 0x2d4   : > { %2159 = vmatmul.msk.f32.gmra.mxu3 %vm844_vm0, %v1660_v50 }
 0x2db   : > { %v1663_v5 = vpop.f32.mrf.mxu2 }
 0x2dc   : > { %2160 = vmatmul.msk.f32.gmra.mxu3 %vm844_vm0, %v1663_v5 }
 0x2e3   : > { %v1666_v6 = vpop.f32.mrf.mxu2 }
 0x2e4   : > { %2161 = vmatmul.msk.f32.gmra.mxu3 %vm844_vm0, %v1666_v6 }
 0x2eb   : > { %v1669_v55 = vpop.f32.mrf.mxu2 }
 0x2ec   : > { %2162 = vmatmul.msk.f32.gmra.mxu3 %vm844_vm0, %v1669_v55 }
 0x2f3   : > { %v1672_v8 = vpop.f32.mrf.mxu2 }
 0x2f4   : > { %2163 = vmatmul.msk.f32.gmra.mxu3 %vm844_vm0, %v1672_v8 }
 0x2ff   : > { %v1675_v10 = vpop.f32.mrf.mxu2 }
 0x300   : > { %2164 = vmatmul.msk.f32.gmra.mxu3 %vm844_vm0, %v1675_v10 }
 0x307   : > { %v1678_v11 = vpop.f32.mrf.mxu2 }
 0x308   : > { %2165 = vmatmul.msk.f32.gmra.mxu3 %vm844_vm0, %v1678_v11 }
 0x30f   : > { %v1681_v13 = vpop.f32.mrf.mxu2 }
 0x310   : > { %2166 = vmatmul.msk.f32.gmra.mxu3 %vm844_vm0, %v1681_v13 }
 0x317   : > { %v1684_v9 = vpop.f32.mrf.mxu2 }
 0x318   : > { %2167 = vmatmul.msk.f32.gmra.mxu3 %vm844_vm0, %v1684_v9 }
 0x31f   : > { %v1687_v15 = vpop.f32.mrf.mxu2 }
 0x320   : > { %2168 = vmatmul.msk.f32.gmra.mxu3 %vm844_vm0, %v1687_v15 }
 0x327   : > { %v1690_v54 = vpop.f32.mrf.mxu2 }
 0x328   : > { %2169 = vmatmul.msk.f32.gmra.mxu3 %vm844_vm0, %v1690_v54 }
 0x32f   : > { %v1693_v16 = vpop.f32.mrf.mxu2 }
 0x330   : > { %2170 = vmatmul.msk.f32.gmra.mxu3 %vm844_vm0, %v1693_v16 }
 0x337   : > { %v1696_v17 = vpop.f32.mrf.mxu2 }
 0x338   : > { %2171 = vmatmul.msk.f32.gmra.mxu3 %vm844_vm0, %v1696_v17 }
 0x33f   : > { %v1699_v38 = vpop.f32.mrf.mxu2 }
 0x340   : > { %2172 = vmatmul.msk.f32.gmra.mxu3 %vm844_vm0, %v1699_v38 }
 0x347   : > { %v1702_v49 = vpop.f32.mrf.mxu2 }
 0x348   : > { %2173 = vmatmul.msk.f32.gmra.mxu3 %vm844_vm0, %v1702_v49 }
 0x34f   : > { %v1789_v19 = vpop.f32.mrf.mxu3 }
 0x350   : > { %v1837_v20 = vadd.f32 %v1789_v19, %v1705_v18 }
 0x352   : > { %1853 = vst [vmem:[#allocation4 + $0x18] sm:$0xff] %v1837_v20 }
 0x357   : > { %v1792_v22 = vpop.f32.mrf.mxu3 }
 0x358   : > { %v1838_v23 = vadd.f32 %v1792_v22, %v1706_v21 }
 0x35a   : > { %1854 = vst [vmem:[#allocation4 + $0x10] sm:$0xff] %v1838_v23 }
 0x35f   : > { %v1795_v28 = vpop.f32.mrf.mxu3 }
 0x360   : > { %v1839_v29 = vadd.f32 %v1795_v28, %v1707_v26 }
 0x362   : > { %1855 = vst [vmem:[#allocation4 + $0x48] sm:$0xff] %v1839_v29 }
 0x367   : > { %v1798_v48 = vpop.f32.mrf.mxu3 }
 0x368   : > { %v1840_v31 = vadd.f32 %v1798_v48, %v1708_v30 }
 0x36a   : > { %1856 = vst [vmem:[#allocation4 + $0x70] sm:$0xff] %v1840_v31 }
 0x36f   : > { %v1801_v33 = vpop.f32.mrf.mxu3 }
 0x370   : > { %v1841_v35 = vadd.f32 %v1801_v33, %v1709_v32 }
 0x372   : > { %1857 = vst [vmem:[#allocation4 + $0x8] sm:$0xff] %v1841_v35 }
 0x377   : > { %v1804_v34 = vpop.f32.mrf.mxu3 }
 0x378   : > { %v1842_v37 = vadd.f32 %v1804_v34, %v1710_v36 }
 0x37a   : > { %1858 = vst [vmem:[#allocation4 + $0x40] sm:$0xff] %v1842_v37 }
 0x383   : > { %v1807_v39 = vpop.f32.mrf.mxu3 }
 0x384   : > { %v1843_v40 = vadd.f32 %v1807_v39, %v1711_v2 }
 0x386   : > { %1859 = vst [vmem:[#allocation4 + $0x68] sm:$0xff] %v1843_v40 }
 0x38b   : > { %v1810_v41 = vpop.f32.mrf.mxu3 }
 0x38c   : > { %v1844_v42 = vadd.f32 %v1810_v41, %v1712_v63 }
 0x38e   : > { %1860 = vst [vmem:[#allocation4 + $0x58] sm:$0xff] %v1844_v42 }
 0x393   : > { %v1813_v44 = vpop.f32.mrf.mxu3 }
 0x394   : > { %v1845_v46 = vadd.f32 %v1813_v44, %v1713_v7 }
 0x396   : > { %1861 = vst [vmem:[#allocation4 + $0x28] sm:$0xff] %v1845_v46 }
 0x39b   : > { %v1816_v51 = vpop.f32.mrf.mxu3 }
 0x39c   : > { %v1846_v52 = vadd.f32 %v1816_v51, %v1714_v47 }
 0x39e   : > { %1862 = vst [vmem:[#allocation4] sm:$0xff] %v1846_v52 }
 0x3a3   : > { %v1819_v45 = vpop.f32.mrf.mxu3 }
 0x3a4   : > { %v1847_v56 = vadd.f32 %v1819_v45, %v1715_v53 }
 0x3a6   : > { %1863 = vst [vmem:[#allocation4 + $0x38] sm:$0xff] %v1847_v56 }
 0x3ab   : > { %v1822_v57 = vpop.f32.mrf.mxu3 }
 0x3ac   : > { %v1848_v14 = vadd.f32 %v1822_v57, %v1716_v43 }
 0x3ae   : > { %1864 = vst [vmem:[#allocation4 + $0x78] sm:$0xff] %v1848_v14 }
 0x3b3   : > { %v1825_v27 = vpop.f32.mrf.mxu3 }
 0x3b4   : > { %v1849_v59 = vadd.f32 %v1825_v27, %v1717_v58 }
 0x3b6   : > { %1865 = vst [vmem:[#allocation4 + $0x30] sm:$0xff] %v1849_v59 }
 0x3bb   : > { %v1828_v60 = vpop.f32.mrf.mxu3 }
 0x3bc   : > { %v1850_v12 = vadd.f32 %v1828_v60, %v1718_v25 }
 0x3be   : > { %1866 = vst [vmem:[#allocation4 + $0x50] sm:$0xff] %v1850_v12 }
 0x3c3   : > { %v1831_v62 = vpop.f32.mrf.mxu3 }
 0x3c4   : > { %v1851_v24 = vadd.f32 %v1831_v62, %v1719_v61 }
 0x3c6   : > { %1867 = vst [vmem:[#allocation4 + $0x20] sm:$0xff] %v1851_v24 }
 0x3cb   : > { %v1834_v1 = vpop.f32.mrf.mxu3 }
 0x3cc   : > { %v1852_v3 = vadd.f32 %v1834_v1, %v1720_v0 }
 0x3ce   : > { %1868 = vst [vmem:[#allocation4 + $0x60] sm:$0xff] %v1852_v3 }
 0x3cf PF: > { %p2174_p8 = scmp.ne.s32.totalorder %s2403_s21, 7 }
 0x3d1   : > { %1872 = sbr.rel (%p2174_p8) target bundleno = 1174 (0x496), region = 72 }
 0x3d6   : > { %v1904_v4 = vld [vmem:[%s3141_s3 + $0x78] sm:$0xff]  ;;  %v1903_v50 = vld [vmem:[%s3141_s3 + $0x70] sm:$0xff]  ;;  %v1902_v5 = vld [vmem:[%s3141_s3 + $0x68] sm:$0xff] }
 0x3d7   : > { %2214 = vmatpush.msra.mxu2 %v1904_v4  ;;  %2215 = vmatpush.msra.mxu3 %v1904_v4  ;;  %v1901_v6 = vld [vmem:[%s3141_s3 + $0x60] sm:$0xff]  ;;  %v1900_v55 = vld [vmem:[%s3141_s3 + $0x58] sm:$0xff]  ;;  %v1899_v8 = vld [vmem:[%s3141_s3 + $0x50] sm:$0xff] }
 0x3d8   : > { %1921 = vmatpush.msra.mxu0 %v1904_v4  ;;  %2213 = vmatpush.msra.mxu1 %v1904_v4  ;;  %v1898_v10 = vld [vmem:[%s3141_s3 + $0x48] sm:$0xff]  ;;  %v1897_v11 = vld [vmem:[%s3141_s3 + $0x40] sm:$0xff]  ;;  %v1896_v13 = vld [vmem:[%s3141_s3 + $0x38] sm:$0xff] }
 0x3d9   : > { %2217 = vmatpush.msra.mxu2 %v1903_v50  ;;  %2218 = vmatpush.msra.mxu3 %v1903_v50  ;;  %v1895_v9 = vld [vmem:[%s3141_s3 + $0x30] sm:$0xff]  ;;  %v1894_v15 = vld [vmem:[%s3141_s3 + $0x28] sm:$0xff]  ;;  %v1893_v54 = vld [vmem:[%s3141_s3 + $0x20] sm:$0xff] }
 0x3da   : > { %1922 = vmatpush.msra.mxu0 %v1903_v50  ;;  %2216 = vmatpush.msra.mxu1 %v1903_v50  ;;  %v1892_v16 = vld [vmem:[%s3141_s3 + $0x18] sm:$0xff]  ;;  %v1891_v17 = vld [vmem:[%s3141_s3 + $0x10] sm:$0xff]  ;;  %v1890_v38 = vld [vmem:[%s3141_s3 + $0x8] sm:$0xff] }
 0x3db   : > { %2220 = vmatpush.msra.mxu2 %v1902_v5  ;;  %2221 = vmatpush.msra.mxu3 %v1902_v5  ;;  %v1889_v49 = vld [vmem:[%s3141_s3] sm:$0xff]  ;;  %v1881_v18 = vld [vmem:[#allocation3 + $0x70] sm:$0xff]  ;;  %v1877_v21 = vld [vmem:[#allocation3 + $0x8] sm:$0xff] }
 0x3dc   : > { %1923 = vmatpush.msra.mxu0 %v1902_v5  ;;  %2219 = vmatpush.msra.mxu1 %v1902_v5  ;;  %v1885_v19 = vld [vmem:[#allocation3 + $0x10] sm:$0xff]  ;;  %v1873_v20 = vld [vmem:[#allocation3] sm:$0xff]  ;;  %v1874_v26 = vld [vmem:[#allocation3 + $0x48] sm:$0xff] }
 0x3dd   : > { %2223 = vmatpush.msra.mxu2 %v1901_v6  ;;  %2224 = vmatpush.msra.mxu3 %v1901_v6  ;;  %v1882_v22 = vld [vmem:[#allocation3 + $0x60] sm:$0xff]  ;;  %v1886_v23 = vld [vmem:[#allocation3 + $0x30] sm:$0xff]  ;;  %v1883_v29 = vld [vmem:[#allocation3 + $0x18] sm:$0xff] }
 0x3de   : > { %1924 = vmatpush.msra.mxu0 %v1901_v6  ;;  %2222 = vmatpush.msra.mxu1 %v1901_v6  ;;  %v1878_v28 = vld [vmem:[#allocation3 + $0x50] sm:$0xff]  ;;  %v1887_v30 = vld [vmem:[#allocation3 + $0x28] sm:$0xff]  ;;  %v1879_v31 = vld [vmem:[#allocation3 + $0x40] sm:$0xff] }
 0x3df   : > { %2226 = vmatpush.msra.mxu2 %v1900_v55  ;;  %2227 = vmatpush.msra.mxu3 %v1900_v55  ;;  %v1875_v48 = vld [vmem:[#allocation3 + $0x68] sm:$0xff]  ;;  %v1884_v32 = vld [vmem:[#allocation3 + $0x20] sm:$0xff]  ;;  %v1888_v33 = vld [vmem:[#allocation3 + $0x58] sm:$0xff] }
 0x3e0   : > { %1925 = vmatpush.msra.mxu0 %v1900_v55  ;;  %2225 = vmatpush.msra.mxu1 %v1900_v55  ;;  %v1876_v35 = vld [vmem:[#allocation3 + $0x78] sm:$0xff]  ;;  %v1909_v37 = vld [vmem:[#allocation4 + $0x8] sm:$0xff]  ;;  %v1917_v42 = vld [vmem:[#allocation4 + $0x30] sm:$0xff] }
 0x3e1   : > { %2229 = vmatpush.msra.mxu2 %v1899_v8  ;;  %2230 = vmatpush.msra.mxu3 %v1899_v8  ;;  %v1880_v36 = vld [vmem:[#allocation3 + $0x38] sm:$0xff]  ;;  %v1913_v41 = vld [vmem:[#allocation4 + $0x28] sm:$0xff]  ;;  %v1906_v51 = vld [vmem:[#allocation4 + $0x10] sm:$0xff] }
 0x3e2   : > { %1926 = vmatpush.msra.mxu0 %v1899_v8  ;;  %2228 = vmatpush.msra.mxu1 %v1899_v8  ;;  %v1905_v34 = vld [vmem:[#allocation4 + $0x18] sm:$0xff]  ;;  %v1910_v52 = vld [vmem:[#allocation4 + $0x40] sm:$0xff]  ;;  %v1918_v14 = vld [vmem:[#allocation4 + $0x50] sm:$0xff] }
 0x3e3   : > { %2232 = vmatpush.msra.mxu2 %v1898_v10  ;;  %2233 = vmatpush.msra.mxu3 %v1898_v10  ;;  %v1914_v57 = vld [vmem:[#allocation4] sm:$0xff]  ;;  %v1907_v60 = vld [vmem:[#allocation4 + $0x48] sm:$0xff]  ;;  %v1915_v1 = vld [vmem:[#allocation4 + $0x38] sm:$0xff] }
 0x3e4   : > { %1927 = vmatpush.msra.mxu0 %v1898_v10  ;;  %2231 = vmatpush.msra.mxu1 %v1898_v10  ;;  %v1911_v12 = vld [vmem:[#allocation4 + $0x68] sm:$0xff]  ;;  %v1919_v3 = vld [vmem:[#allocation4 + $0x20] sm:$0xff]  ;;  %v1908_v55 = vld [vmem:[#allocation4 + $0x70] sm:$0xff] }
 0x3e5   : > { %2235 = vmatpush.msra.mxu2 %v1897_v11  ;;  %2236 = vmatpush.msra.mxu3 %v1897_v11  ;;  %v1912_v8 = vld [vmem:[#allocation4 + $0x58] sm:$0xff] }
 0x3e6   : > { %1928 = vmatpush.msra.mxu0 %v1897_v11  ;;  %2234 = vmatpush.msra.mxu1 %v1897_v11 }
 0x3e7   : > { %2238 = vmatpush.msra.mxu2 %v1896_v13  ;;  %2239 = vmatpush.msra.mxu3 %v1896_v13 }
 0x3e8   : > { %1929 = vmatpush.msra.mxu0 %v1896_v13  ;;  %2237 = vmatpush.msra.mxu1 %v1896_v13 }
 0x3e9   : > { %2241 = vmatpush.msra.mxu2 %v1895_v9  ;;  %2242 = vmatpush.msra.mxu3 %v1895_v9 }
 0x3ea   : > { %1930 = vmatpush.msra.mxu0 %v1895_v9  ;;  %2240 = vmatpush.msra.mxu1 %v1895_v9 }
 0x3eb   : > { %2244 = vmatpush.msra.mxu2 %v1894_v15  ;;  %2245 = vmatpush.msra.mxu3 %v1894_v15 }
 0x3ec   : > { %1931 = vmatpush.msra.mxu0 %v1894_v15  ;;  %2243 = vmatpush.msra.mxu1 %v1894_v15  ;;  %v1916_v15 = vld [vmem:[#allocation4 + $0x78] sm:$0xff] }
 0x3ed   : > { %2247 = vmatpush.msra.mxu2 %v1893_v54  ;;  %2248 = vmatpush.msra.mxu3 %v1893_v54 }
 0x3ee   : > { %1932 = vmatpush.msra.mxu0 %v1893_v54  ;;  %2246 = vmatpush.msra.mxu1 %v1893_v54  ;;  %v1920_v54 = vld [vmem:[#allocation4 + $0x60] sm:$0xff] }
 0x3ef   : > { %2250 = vmatpush.msra.mxu2 %v1892_v16  ;;  %2251 = vmatpush.msra.mxu3 %v1892_v16 }
 0x3f0   : > { %1933 = vmatpush.msra.mxu0 %v1892_v16  ;;  %2249 = vmatpush.msra.mxu1 %v1892_v16 }
 0x3f1   : > { %2253 = vmatpush.msra.mxu2 %v1891_v17  ;;  %2254 = vmatpush.msra.mxu3 %v1891_v17 }
 0x3f2   : > { %1934 = vmatpush.msra.mxu0 %v1891_v17  ;;  %2252 = vmatpush.msra.mxu1 %v1891_v17 }
 0x3f3   : > { %2256 = vmatpush.msra.mxu2 %v1890_v38  ;;  %2257 = vmatpush.msra.mxu3 %v1890_v38 }
 0x3f4   : > { %1935 = vmatpush.msra.mxu0 %v1890_v38  ;;  %2255 = vmatpush.msra.mxu1 %v1890_v38 }
 0x3f5   : > { %2259 = vmatpush.msra.mxu2 %v1889_v49  ;;  %2260 = vmatpush.msra.mxu3 %v1889_v49 }
 0x3f6   : > { %1961 = vmatmul.f32.vlgmr.msra.gmra.mxu2 %v1881_v18  ;;  %1973 = vmatmul.f32.vlgmr.msra.gmra.mxu3 %v1885_v19 }
 0x3f7   : > { %1936 = vmatpush.msra.mxu0 %v1889_v49  ;;  %2258 = vmatpush.msra.mxu1 %v1889_v49 }
 0x3f8   : > { %1937 = vmatmul.f32.vlgmr.msra.gmra.mxu0 %v1873_v20  ;;  %1949 = vmatmul.f32.vlgmr.msra.gmra.mxu1 %v1877_v21 }
 0x3fe   : > { %1964 = vmatmul.f32.gmra.mxu2 %v1882_v22  ;;  %1976 = vmatmul.f32.gmra.mxu3 %v1886_v23 }
 0x400   : > { %1940 = vmatmul.f32.gmra.mxu0 %v1874_v26  ;;  %1952 = vmatmul.f32.gmra.mxu1 %v1878_v28 }
 0x406   : > { %1967 = vmatmul.f32.gmra.mxu2 %v1883_v29  ;;  %1979 = vmatmul.f32.gmra.mxu3 %v1887_v30 }
 0x408   : > { %1943 = vmatmul.f32.gmra.mxu0 %v1875_v48  ;;  %1955 = vmatmul.f32.gmra.mxu1 %v1879_v31 }
 0x40e   : > { %1970 = vmatmul.f32.gmra.mxu2 %v1884_v32  ;;  %1982 = vmatmul.f32.gmra.mxu3 %v1888_v33 }
 0x410   : > { %1946 = vmatmul.f32.gmra.mxu0 %v1876_v35  ;;  %1958 = vmatmul.f32.gmra.mxu1 %v1880_v36 }
 0x475   : > { %v1938_v2 = vpop.f32.mrf.mxu0  ;;  %v1950_v39 = vpop.f32.mrf.mxu1 }
 0x476   : > { %v1939_v40 = vadd.f32 %v1938_v2, %v1905_v34  ;;  %v1951_v63 = vadd.f32 %v1950_v39, %v1909_v37 }
 0x478   : > { %1986 = vst [vmem:[%s2534_s18] sm:$0xff] %v1939_v40 }
 0x479   : > { %1990 = vst [vmem:[%s2534_s18 + $0x20] sm:$0xff] %v1951_v63  ;;  %v1962_v7 = vpop.f32.mrf.mxu2  ;;  %v1974_v44 = vpop.f32.mrf.mxu3 }
 0x47a   : > { %v1963_v46 = vadd.f32 %v1962_v7, %v1913_v41  ;;  %v1975_v47 = vadd.f32 %v1974_v44, %v1917_v42 }
 0x47c   : > { %1994 = vst [vmem:[%s2534_s18 + $0x40] sm:$0xff] %v1963_v46 }
 0x47d   : > { %1998 = vst [vmem:[%s2534_s18 + $0x60] sm:$0xff] %v1975_v47  ;;  %v1941_v53 = vpop.f32.mrf.mxu0  ;;  %v1953_v45 = vpop.f32.mrf.mxu1 }
 0x47e   : > { %v1942_v56 = vadd.f32 %v1941_v53, %v1906_v51  ;;  %v1954_v43 = vadd.f32 %v1953_v45, %v1910_v52 }
 0x480   : > { %1987 = vst [vmem:[%s2534_s18 + $0x8] sm:$0xff] %v1942_v56 }
 0x481   : > { %1991 = vst [vmem:[%s2534_s18 + $0x28] sm:$0xff] %v1954_v43  ;;  %v1965_v58 = vpop.f32.mrf.mxu2  ;;  %v1977_v27 = vpop.f32.mrf.mxu3 }
 0x482   : > { %v1966_v59 = vadd.f32 %v1965_v58, %v1914_v57  ;;  %v1978_v25 = vadd.f32 %v1977_v27, %v1918_v14 }
 0x484   : > { %1995 = vst [vmem:[%s2534_s18 + $0x48] sm:$0xff] %v1966_v59 }
 0x485   : > { %1999 = vst [vmem:[%s2534_s18 + $0x68] sm:$0xff] %v1978_v25  ;;  %v1944_v61 = vpop.f32.mrf.mxu0  ;;  %v1956_v62 = vpop.f32.mrf.mxu1 }
 0x486   : > { %v1945_v24 = vadd.f32 %v1944_v61, %v1907_v60  ;;  %v1957_v0 = vadd.f32 %v1956_v62, %v1911_v12 }
 0x488   : > { %1988 = vst [vmem:[%s2534_s18 + $0x10] sm:$0xff] %v1945_v24 }
 0x489   : > { %1992 = vst [vmem:[%s2534_s18 + $0x30] sm:$0xff] %v1957_v0  ;;  %v1968_v4 = vpop.f32.mrf.mxu2  ;;  %v1980_v50 = vpop.f32.mrf.mxu3 }
 0x48a   : > { %v1969_v5 = vadd.f32 %v1968_v4, %v1915_v1  ;;  %v1981_v6 = vadd.f32 %v1980_v50, %v1919_v3 }
 0x48c   : > { %1996 = vst [vmem:[%s2534_s18 + $0x50] sm:$0xff] %v1969_v5 }
 0x48d   : > { %2000 = vst [vmem:[%s2534_s18 + $0x70] sm:$0xff] %v1981_v6  ;;  %v1947_v10 = vpop.f32.mrf.mxu0  ;;  %v1959_v11 = vpop.f32.mrf.mxu1 }
 0x48e   : > { %v1948_v13 = vadd.f32 %v1947_v10, %v1908_v55  ;;  %v1960_v9 = vadd.f32 %v1959_v11, %v1912_v8 }
 0x490   : > { %1989 = vst [vmem:[%s2534_s18 + $0x18] sm:$0xff] %v1948_v13 }
 0x491   : > { %1993 = vst [vmem:[%s2534_s18 + $0x38] sm:$0xff] %v1960_v9  ;;  %v1971_v16 = vpop.f32.mrf.mxu2  ;;  %v1983_v17 = vpop.f32.mrf.mxu3 }
 0x492   : > { %v1972_v38 = vadd.f32 %v1971_v16, %v1916_v15  ;;  %v1984_v49 = vadd.f32 %v1983_v17, %v1920_v54 }
 0x494   : > { %1997 = vst [vmem:[%s2534_s18 + $0x58] sm:$0xff] %v1972_v38 }
 0x495   : > { %2001 = vst [vmem:[%s2534_s18 + $0x78] sm:$0xff] %v1984_v49 }
 0x496 PF: > { %s29_s25 = sadd.s32 1, %s2419_s25   ;;  %s3152_s21 = smov %s2411_s23 }
 0x497   : > { %p26_p9 = scmp.ge.s32.totalorder %s29_s25, 18   ;;  %s3153_s22 = smov %s2415_s24 }
 0x498   : > { %s3154_s23 = smov %s3157_s0  ;;  %s3155_s24 = smov %s3161_s26 }
 0x499   :  { %28 = sbr.rel (!%p26_p9) target bundleno = 9 (0x9), region = 111 }

</bundles_post_ra>
